<compile_context>
chip_gen: v7x
topology: tpu7x:2x2x1
jax: 0.10.0
libtpu: 0.0.40
codegen_flags: <defaults>
</compile_context>

<pallas_src>
import functools
import math

import jax
import jax.numpy as jnp
from jax.experimental import pallas as pl
from jax.experimental.pallas import tpu as pltpu

LN_EPS = 1e-5  # PyTorch nn.LayerNorm default


def _layernorm(x, gamma, beta):
    """Biased-variance LayerNorm over the last dim (f32)."""
    mean = jnp.mean(x, axis=-1, keepdims=True)
    xc = x - mean
    var = jnp.mean(xc * xc, axis=-1, keepdims=True)
    return xc * jax.lax.rsqrt(var + LN_EPS) * gamma + beta


# ----------------------------------------------------------------------------
# Fused encoder kernel: grid = (batch_tiles, layers)
# ----------------------------------------------------------------------------
def _encoder_kernel(
    # per-batch-tile input (already input-projected + PE-added, f32)
    h0_ref,
    # lane-padded output projection (tiny, grid-constant)
    wo_ref, bo_ref,
    # stacked per-layer params (leading axis = layer, selected via BlockSpec)
    qkv_w_ref, qkv_b_ref, ao_w_ref, ao_b_ref,
    ln1_g_ref, ln1_b_ref,
    ff1_w_ref, ff1_b_ref, ff2_w_ref, ff2_b_ref,
    ln2_g_ref, ln2_b_ref,
    # output + resident activation scratch
    o_ref, h_ref,
    *, bt, S, nhead):
    layer = pl.program_id(1)
    D = h_ref.shape[-1]
    Dh = D // nhead
    Mt = h_ref.shape[0]                       # bt * S rows in this batch tile

    # --- first layer of this batch tile: load activations into resident VMEM ---
    @pl.when(layer == 0)
    def _():
        h_ref[...] = h0_ref[...]

    h = h_ref[...]                            # (Mt, D) f32, resident across layers
    hb = h.astype(jnp.bfloat16)               # cast once for the QKV projection

    # --- self-attention: packed QKV projection (softmax scale folded into Q) ---
    qkv = jnp.dot(hb, qkv_w_ref[0],
                  preferred_element_type=jnp.float32) + qkv_b_ref[0]  # (Mt, 3D) f32
    qkvb = qkv.astype(jnp.bfloat16)           # single bf16 cast for score/PV matmuls

    # Head-batched layout (nhead*bt, S, Dh), head-major, built with leading-dim
    # reshapes + leading-axis concatenation only (no 4-D transposes).
    # TODO(synk): Dh < 128 means the per-head column windows cannot be fully
    # lane-tile aligned; at production Dh=64 group two heads per 128-lane slab.
    def split_heads(col0):
        parts = [
            qkvb[:, col0 + hd * Dh: col0 + (hd + 1) * Dh].reshape(bt, S, Dh)
            for hd in range(nhead)
        ]
        return jnp.concatenate(parts, axis=0)  # (nhead*bt, S, Dh)

    q = split_heads(0)
    k = split_heads(D)
    v = split_heads(2 * D)

    # One batched contraction over all (head, batch) pairs instead of an
    # unrolled per-head loop of tiny matmuls.
    s = jnp.einsum('bqd,bkd->bqk', q, k,
                   preferred_element_type=jnp.float32)          # (nh*bt, S, S) f32
    m = jnp.max(s, axis=-1, keepdims=True)
    p = jnp.exp(s - m)
    denom = jnp.sum(p, axis=-1, keepdims=True)
    ctx = jnp.einsum('bqk,bkd->bqd', p.astype(jnp.bfloat16), v,
                     preferred_element_type=jnp.float32)        # (nh*bt, S, Dh)
    ctx = (ctx * pl.reciprocal(denom, approx=True)).astype(jnp.bfloat16)

    # Back to the lane-dense (Mt, D) layout, then attention output projection.
    heads = [ctx[hd * bt:(hd + 1) * bt].reshape(Mt, Dh) for hd in range(nhead)]
    attn = jnp.concatenate(heads, axis=-1)                      # (Mt, D) bf16
    attn = jnp.dot(attn, ao_w_ref[0],
                   preferred_element_type=jnp.float32) + ao_b_ref[0]

    h = _layernorm(h + attn, ln1_g_ref[0], ln1_b_ref[0])        # norm1(x + attn)

    # --- feed-forward (ReLU), intermediate cast to bf16 for the second matmul ---
    ffb = h.astype(jnp.bfloat16)
    ff = jnp.dot(ffb, ff1_w_ref[0],
                 preferred_element_type=jnp.float32) + ff1_b_ref[0]
    ff = jnp.maximum(ff, 0.0).astype(jnp.bfloat16)
    ff = jnp.dot(ff, ff2_w_ref[0],
                 preferred_element_type=jnp.float32) + ff2_b_ref[0]
    h = _layernorm(h + ff, ln2_g_ref[0], ln2_b_ref[0])          # norm2(x + ff)
    h_ref[...] = h

    # --- last layer: fused, lane-padded output projection ---
    @pl.when(layer == pl.num_programs(1) - 1)
    def _():
        y = jnp.dot(h.astype(jnp.bfloat16), wo_ref[...],
                    preferred_element_type=jnp.float32) + bo_ref[...]
        o_ref[...] = y.astype(o_ref.dtype)


# ----------------------------------------------------------------------------
# VMEM working-set estimate (rough, for vmem_limit_bytes)
# ----------------------------------------------------------------------------
def _vmem_bytes_estimate(Mt, D, dff, Npad):
    bf, f32 = 2, 4
    layer_w = (D * 3 * D + D * D + D * dff + dff * D) * bf       # matmul weights
    layer_v = (3 * D + 6 * D + dff) * f32                        # biases + LN params
    pipelined = 2 * (layer_w + layer_v)                          # double-buffered
    pipelined += 2 * Mt * D * f32                                # h0 block
    pipelined += 2 * Mt * Npad * f32                             # output block
    pipelined += 2 * (D * Npad * bf + Npad * f32)                # padded out-proj
    resident = Mt * D * f32                                      # h scratch
    interm = Mt * 3 * D * (f32 + bf) + Mt * dff * (f32 + bf) + 6 * Mt * D * f32
    return pipelined + resident + interm


# ----------------------------------------------------------------------------
# Wrapper: XLA prologue + parameter packing + single pallas_call
# ----------------------------------------------------------------------------
def evaluation_transformer_forward(x, params, pe, nhead=8, batch_tile=None):
    """x: (B, S, input_dim) -> (B, S, input_dim)."""
    B, S, In = x.shape
    D = params["input_proj_w"].shape[1]
    dff = params["layers"][0]["ff1_w"].shape[1]
    L = len(params["layers"])
    M = B * S
    Dh = D // nhead
    Npad = ((In + 127) // 128) * 128          # lane-dense padded output width

    # Batch-tile size: whole sequences per tile so attention stays tile-local.
    if batch_tile is None:
        batch_tile = 1
        for d in range(1, B + 1):
            if B % d == 0 and d * S <= 512:
                batch_tile = d
    bt = batch_tile
    assert B % bt == 0, "batch_tile must divide batch"
    nbt = B // bt
    Mt = bt * S
    assert Mt % 8 == 0 or nbt == 1, "batch-tile rows must align to 8 sublanes"

    # ---- XLA prologue: input projection + positional encoding (review rec) ----
    # Keeps the big once-used (M,D) slabs out of the kernel's resident VMEM.
    x2d = x.reshape(M, In).astype(jnp.float32)
    h0 = x2d @ params["input_proj_w"] + params["input_proj_b"][None, :]
    h0 = (h0.reshape(B, S, D) + pe[None, :S, :]).reshape(M, D)

    # ---- parameter packing ----
    # NOTE: synthetic weights are (in, out); importing a PyTorch checkpoint
    # requires transposing its (out, in) Linear / in_proj weights.
    scale = 1.0 / math.sqrt(Dh)               # folded into Q columns + Q bias

    def qkv_w_packed(lp):
        w = lp["in_proj_w"]                   # (D, 3D) = [Q | K | V]
        return jnp.concatenate([w[:, :D] * scale, w[:, D:]], axis=1)

    def qkv_b_packed(lp):
        b = lp["in_proj_b"]
        return jnp.concatenate([b[:D] * scale, b[D:]], axis=0)

    qkv_w = jnp.stack([qkv_w_packed(lp) for lp in params["layers"]]
                      ).astype(jnp.bfloat16)                       # (L, D, 3D)
    qkv_b = jnp.stack([qkv_b_packed(lp) for lp in params["layers"]])[:, None, :]

    stack_w = lambda n: jnp.stack([lp[n] for lp in params["layers"]]
                                  ).astype(jnp.bfloat16)
    stack_v = lambda n: jnp.stack([lp[n] for lp in params["layers"]])[:, None, :]

    ao_w, ff1_w, ff2_w = stack_w("out_proj_w"), stack_w("ff1_w"), stack_w("ff2_w")
    ao_b, ff1_b, ff2_b = stack_v("out_proj_b"), stack_v("ff1_b"), stack_v("ff2_b")
    ln1_g, ln1_b = stack_v("ln1_g"), stack_v("ln1_b")
    ln2_g, ln2_b = stack_v("ln2_g"), stack_v("ln2_b")

    wo_pad = jnp.zeros((D, Npad), jnp.float32
                       ).at[:, :In].set(params["output_proj_w"]).astype(jnp.bfloat16)
    bo_pad = jnp.zeros((1, Npad), jnp.float32).at[0, :In].set(params["output_proj_b"])

    # ---- specs ----
    tile2d = lambda i, l: (i, 0)              # per-batch-tile blocks
    const2d = lambda i, l: (0, 0)             # tiny grid-constant blocks
    per_layer = lambda i, l: (l, 0, 0)        # per-layer weights (double-buffered)

    in_specs = [
        pl.BlockSpec((Mt, D), tile2d),            # h0 (projected + PE)
        pl.BlockSpec((D, Npad), const2d),         # padded output_proj weight
        pl.BlockSpec((1, Npad), const2d),         # padded output_proj bias
        pl.BlockSpec((1, D, 3 * D), per_layer),   # qkv weight (scale folded in Q)
        pl.BlockSpec((1, 1, 3 * D), per_layer),   # qkv bias
        pl.BlockSpec((1, D, D), per_layer),       # attn out-proj weight
        pl.BlockSpec((1, 1, D), per_layer),       # attn out-proj bias
        pl.BlockSpec((1, 1, D), per_layer),       # ln1 gamma
        pl.BlockSpec((1, 1, D), per_layer),       # ln1 beta
        pl.BlockSpec((1, D, dff), per_layer),     # ff1 weight
        pl.BlockSpec((1, 1, dff), per_layer),     # ff1 bias
        pl.BlockSpec((1, dff, D), per_layer),     # ff2 weight
        pl.BlockSpec((1, 1, D), per_layer),       # ff2 bias
        pl.BlockSpec((1, 1, D), per_layer),       # ln2 gamma
        pl.BlockSpec((1, 1, D), per_layer),       # ln2 beta
    ]

    est = _vmem_bytes_estimate(Mt, D, dff, Npad)
    # Clamp to v7x's 64 MiB physical VMEM; on v6e this could be raised further.
    vmem_limit = int(min(64 * 2**20, max(32 * 2**20, 2 * est)))

    out_pad = pl.pallas_call(
        functools.partial(_encoder_kernel, bt=bt, S=S, nhead=nhead),
        out_shape=jax.ShapeDtypeStruct((M, Npad), jnp.float32),
        grid=(nbt, L),                            # (batch tiles, layers)
        in_specs=in_specs,
        out_specs=pl.BlockSpec((Mt, Npad), tile2d),
        scratch_shapes=[pltpu.VMEM((Mt, D), jnp.float32)],   # resident activations
        compiler_params=pltpu.CompilerParams(
            dimension_semantics=("parallel", "arbitrary"),   # batch ∥, layers seq.
            vmem_limit_bytes=vmem_limit),
    )(h0, wo_pad, bo_pad,
      qkv_w, qkv_b, ao_w, ao_b, ln1_g, ln1_b,
      ff1_w, ff1_b, ff2_w, ff2_b, ln2_g, ln2_b)

    return out_pad[:, :In].reshape(B, S, In)


# ----------------------------------------------------------------------------
# Deterministic parameter / buffer construction (synthetic, no checkpoint)
# ----------------------------------------------------------------------------
def _xavier_uniform(key, shape):
    fan_in, fan_out = shape
    limit = math.sqrt(6.0 / (fan_in + fan_out))
    return jax.random.uniform(key, shape, jnp.float32, -limit, limit)


def make_params(key, input_dim, d_model, dim_feedforward, num_layers=2):
    keys = iter(jax.random.split(key, 4 + 8 * num_layers))
    params = {
        "input_proj_w": _xavier_uniform(next(keys), (input_dim, d_model)),
        "input_proj_b": jnp.zeros((d_model,), jnp.float32),
        "output_proj_w": _xavier_uniform(next(keys), (d_model, input_dim)),
        "output_proj_b": jnp.zeros((input_dim,), jnp.float32),
        "layers": [],
    }
    for _ in range(num_layers):
        params["layers"].append({
            "in_proj_w": _xavier_uniform(next(keys), (d_model, 3 * d_model)),
            "in_proj_b": jnp.zeros((3 * d_model,), jnp.float32),
            "out_proj_w": _xavier_uniform(next(keys), (d_model, d_model)),
            "out_proj_b": jnp.zeros((d_model,), jnp.float32),
            "ff1_w": _xavier_uniform(next(keys), (d_model, dim_feedforward)),
            "ff1_b": jnp.zeros((dim_feedforward,), jnp.float32),
            "ff2_w": _xavier_uniform(next(keys), (dim_feedforward, d_model)),
            "ff2_b": jnp.zeros((d_model,), jnp.float32),
            "ln1_g": jnp.ones((d_model,), jnp.float32),
            "ln1_b": jnp.zeros((d_model,), jnp.float32),
            "ln2_g": jnp.ones((d_model,), jnp.float32),
            "ln2_b": jnp.zeros((d_model,), jnp.float32),
        })
    return params


def positional_encoding(d_model, max_len):
    """Matches EvaluationTransformer._generate_positional_encoding."""
    position = jnp.arange(max_len, dtype=jnp.float32)[:, None]
    div_term = jnp.exp(
        jnp.arange(0, d_model, 2, dtype=jnp.float32) * -(math.log(10000.0) / d_model)
    )
    pe = jnp.zeros((max_len, d_model), jnp.float32)
    pe = pe.at[:, 0::2].set(jnp.sin(position * div_term))
    pe = pe.at[:, 1::2].set(jnp.cos(position * div_term))
    return pe


# ----------------------------------------------------------------------------
if __name__ == "__main__":
    # Small shapes consistent with the module's forward:
    #   x: (batch, seq_len, input_dim); d_model reduced from 512 for the test,
    #   nhead kept at 8 (hard-coded in the module), FFN scaled down from 2048.
    # TODO(synk): dropout (p=0.1) is training-only; the inference forward is identity.
    batch, seq_len, input_dim = 2, 8, 16
    d_model, dim_feedforward, nhead, num_layers = 128, 256, 8, 2

    key = jax.random.PRNGKey(0)
    k_params, k_x = jax.random.split(key)

    params = make_params(k_params, input_dim, d_model, dim_feedforward, num_layers)
    pe = positional_encoding(d_model, max_len=seq_len)
    x = jax.random.normal(k_x, (batch, seq_len, input_dim), jnp.float32)

    # batch_tile=1 -> grid=(2, 2): exercises the parallel batch-tile axis and
    # the per-tile activation-residency / writeback path.
    fwd = jax.jit(functools.partial(evaluation_transformer_forward,
                                    nhead=nhead, batch_tile=1))
    out = jax.block_until_ready(fwd(x, params, pe))

    assert out.shape == (batch, seq_len, input_dim)
    assert bool(jnp.all(jnp.isfinite(out)))
    print("KERNEL_OK")
</pallas_src>

<mosaic_0001>
module attributes {stable_mosaic.version = 11 : i64} {
  func.func @_encoder_kernel(%arg0: i32, %arg1: i32, %arg2: memref<8x128xf32, #tpu.memory_space<vmem>>, %arg3: memref<128x128xbf16, #tpu.memory_space<vmem>>, %arg4: memref<1x128xf32, #tpu.memory_space<vmem>>, %arg5: memref<1x128x384xbf16, #tpu.memory_space<vmem>>, %arg6: memref<1x1x384xf32, #tpu.memory_space<vmem>>, %arg7: memref<1x128x128xbf16, #tpu.memory_space<vmem>>, %arg8: memref<1x1x128xf32, #tpu.memory_space<vmem>>, %arg9: memref<1x1x128xf32, #tpu.memory_space<vmem>>, %arg10: memref<1x1x128xf32, #tpu.memory_space<vmem>>, %arg11: memref<1x128x256xbf16, #tpu.memory_space<vmem>>, %arg12: memref<1x1x256xf32, #tpu.memory_space<vmem>>, %arg13: memref<1x256x128xbf16, #tpu.memory_space<vmem>>, %arg14: memref<1x1x128xf32, #tpu.memory_space<vmem>>, %arg15: memref<1x1x128xf32, #tpu.memory_space<vmem>>, %arg16: memref<1x1x128xf32, #tpu.memory_space<vmem>>, %arg17: memref<8x128xf32, #tpu.memory_space<vmem>>, %arg18: memref<8x128xf32, #tpu.memory_space<vmem>>) attributes {dimension_semantics = [#tpu.dimension_semantics<parallel>, #tpu.dimension_semantics<arbitrary>], iteration_bounds = array<i64: 2, 2>, scalar_prefetch = 0 : i64, scratch_operands = 1 : i64, tpu.core_type = #tpu.core_type<tc>, window_params = [{transform_indices = @transform_0, window_bounds = array<i64: 8, 128>}, {pipeline_mode = #tpu.pipeline_mode<synchronous>, transform_indices = @transform_1, window_bounds = array<i64: 128, 128>}, {pipeline_mode = #tpu.pipeline_mode<synchronous>, transform_indices = @transform_2, window_bounds = array<i64: 1, 128>}, {transform_indices = @transform_3, window_bounds = array<i64: 1, 128, 384>}, {transform_indices = @transform_4, window_bounds = array<i64: 1, 1, 384>}, {transform_indices = @transform_5, window_bounds = array<i64: 1, 128, 128>}, {transform_indices = @transform_6, window_bounds = array<i64: 1, 1, 128>}, {transform_indices = @transform_7, window_bounds = array<i64: 1, 1, 128>}, {transform_indices = @transform_8, window_bounds = array<i64: 1, 1, 128>}, {transform_indices = @transform_9, window_bounds = array<i64: 1, 128, 256>}, {transform_indices = @transform_10, window_bounds = array<i64: 1, 1, 256>}, {transform_indices = @transform_11, window_bounds = array<i64: 1, 256, 128>}, {transform_indices = @transform_12, window_bounds = array<i64: 1, 1, 128>}, {transform_indices = @transform_13, window_bounds = array<i64: 1, 1, 128>}, {transform_indices = @transform_14, window_bounds = array<i64: 1, 1, 128>}, {transform_indices = @transform_15, window_bounds = array<i64: 8, 128>}]} {
    %c0_i32 = arith.constant 0 : i32
    %0 = arith.cmpi eq, %arg1, %c0_i32 : i32
    %1 = arith.extui %0 : i1 to i32
    %c0_i32_0 = arith.constant 0 : i32
    %2 = arith.cmpi ne, %1, %c0_i32_0 : i32
    scf.if %2 {
      %c0_59 = arith.constant 0 : index
      %c0_60 = arith.constant 0 : index
      %174 = vector.load %arg2[%c0_59, %c0_60] : memref<8x128xf32, #tpu.memory_space<vmem>>, vector<8x128xf32>
      %c0_61 = arith.constant 0 : index
      %c0_62 = arith.constant 0 : index
      %175 = vector.load %arg18[%c0_61, %c0_62] : memref<8x128xf32, #tpu.memory_space<vmem>>, vector<8x128xf32>
      tpu.vector_store %arg18[%c0_61, %c0_62], %174 {strides = array<i32>} : memref<8x128xf32, #tpu.memory_space<vmem>>, vector<8x128xf32>,
    } else {
    }
    %c0 = arith.constant 0 : index
    %c0_1 = arith.constant 0 : index
    %3 = vector.load %arg18[%c0, %c0_1] : memref<8x128xf32, #tpu.memory_space<vmem>>, vector<8x128xf32>
    %4 = arith.truncf %3 : vector<8x128xf32> to vector<8x128xbf16>
    %c0_2 = arith.constant 0 : index
    %c0_3 = arith.constant 0 : index
    %c0_4 = arith.constant 0 : index
    %5 = vector.load %arg5[%c0_2, %c0_3, %c0_4] : memref<1x128x384xbf16, #tpu.memory_space<vmem>>, vector<1x128x384xbf16>
    %6 = vector.shape_cast %5 : vector<1x128x384xbf16> to vector<128x384xbf16>
    %cst = arith.constant dense<0.000000e+00> : vector<8x384xf32>
    %7 = tpu.matmul %4, %6, %cst {dimension_numbers = #tpu.dot_dimension_numbers<[1], [0], [0], [1], [0, 0, 1, 1], [], []>} : vector<8x128xbf16>, vector<128x384xbf16>, vector<8x384xf32> -> vector<8x384xf32>
    %c0_5 = arith.constant 0 : index
    %c0_6 = arith.constant 0 : index
    %c0_7 = arith.constant 0 : index
    %8 = vector.load %arg6[%c0_5, %c0_6, %c0_7] : memref<1x1x384xf32, #tpu.memory_space<vmem>>, vector<1x1x384xf32>
    %9 = vector.shape_cast %8 : vector<1x1x384xf32> to vector<1x384xf32>
    %10 = vector.broadcast %9 : vector<1x384xf32> to vector<8x384xf32>
    %11 = arith.addf %7, %10 : vector<8x384xf32>
    %12 = arith.truncf %11 : vector<8x384xf32> to vector<8x384xbf16>
    %13 = vector.extract_strided_slice %12 {offsets = [0, 0], sizes = [8, 16], strides = [1, 1]} : vector<8x384xbf16> to vector<8x16xbf16>
    %14 = vector.shape_cast %13 : vector<8x16xbf16> to vector<1x8x16xbf16>
    %15 = vector.extract_strided_slice %12 {offsets = [0, 16], sizes = [8, 16], strides = [1, 1]} : vector<8x384xbf16> to vector<8x16xbf16>
    %16 = vector.shape_cast %15 : vector<8x16xbf16> to vector<1x8x16xbf16>
    %17 = vector.extract_strided_slice %12 {offsets = [0, 32], sizes = [8, 16], strides = [1, 1]} : vector<8x384xbf16> to vector<8x16xbf16>
    %18 = vector.shape_cast %17 : vector<8x16xbf16> to vector<1x8x16xbf16>
    %19 = vector.extract_strided_slice %12 {offsets = [0, 48], sizes = [8, 16], strides = [1, 1]} : vector<8x384xbf16> to vector<8x16xbf16>
    %20 = vector.shape_cast %19 : vector<8x16xbf16> to vector<1x8x16xbf16>
    %21 = vector.extract_strided_slice %12 {offsets = [0, 64], sizes = [8, 16], strides = [1, 1]} : vector<8x384xbf16> to vector<8x16xbf16>
    %22 = vector.shape_cast %21 : vector<8x16xbf16> to vector<1x8x16xbf16>
    %23 = vector.extract_strided_slice %12 {offsets = [0, 80], sizes = [8, 16], strides = [1, 1]} : vector<8x384xbf16> to vector<8x16xbf16>
    %24 = vector.shape_cast %23 : vector<8x16xbf16> to vector<1x8x16xbf16>
    %25 = vector.extract_strided_slice %12 {offsets = [0, 96], sizes = [8, 16], strides = [1, 1]} : vector<8x384xbf16> to vector<8x16xbf16>
    %26 = vector.shape_cast %25 : vector<8x16xbf16> to vector<1x8x16xbf16>
    %27 = vector.extract_strided_slice %12 {offsets = [0, 112], sizes = [8, 16], strides = [1, 1]} : vector<8x384xbf16> to vector<8x16xbf16>
    %28 = vector.shape_cast %27 : vector<8x16xbf16> to vector<1x8x16xbf16>
    %29 = tpu.concatenate %14, %16, %18, %20, %22, %24, %26, %28 in 0 : vector<1x8x16xbf16>, vector<1x8x16xbf16>, vector<1x8x16xbf16>, vector<1x8x16xbf16>, vector<1x8x16xbf16>, vector<1x8x16xbf16>, vector<1x8x16xbf16>, vector<1x8x16xbf16> -> vector<8x8x16xbf16>
    %30 = vector.extract_strided_slice %12 {offsets = [0, 128], sizes = [8, 16], strides = [1, 1]} : vector<8x384xbf16> to vector<8x16xbf16>
    %31 = vector.shape_cast %30 : vector<8x16xbf16> to vector<1x8x16xbf16>
    %32 = vector.extract_strided_slice %12 {offsets = [0, 144], sizes = [8, 16], strides = [1, 1]} : vector<8x384xbf16> to vector<8x16xbf16>
    %33 = vector.shape_cast %32 : vector<8x16xbf16> to vector<1x8x16xbf16>
    %34 = vector.extract_strided_slice %12 {offsets = [0, 160], sizes = [8, 16], strides = [1, 1]} : vector<8x384xbf16> to vector<8x16xbf16>
    %35 = vector.shape_cast %34 : vector<8x16xbf16> to vector<1x8x16xbf16>
    %36 = vector.extract_strided_slice %12 {offsets = [0, 176], sizes = [8, 16], strides = [1, 1]} : vector<8x384xbf16> to vector<8x16xbf16>
    %37 = vector.shape_cast %36 : vector<8x16xbf16> to vector<1x8x16xbf16>
    %38 = vector.extract_strided_slice %12 {offsets = [0, 192], sizes = [8, 16], strides = [1, 1]} : vector<8x384xbf16> to vector<8x16xbf16>
    %39 = vector.shape_cast %38 : vector<8x16xbf16> to vector<1x8x16xbf16>
    %40 = vector.extract_strided_slice %12 {offsets = [0, 208], sizes = [8, 16], strides = [1, 1]} : vector<8x384xbf16> to vector<8x16xbf16>
    %41 = vector.shape_cast %40 : vector<8x16xbf16> to vector<1x8x16xbf16>
    %42 = vector.extract_strided_slice %12 {offsets = [0, 224], sizes = [8, 16], strides = [1, 1]} : vector<8x384xbf16> to vector<8x16xbf16>
    %43 = vector.shape_cast %42 : vector<8x16xbf16> to vector<1x8x16xbf16>
    %44 = vector.extract_strided_slice %12 {offsets = [0, 240], sizes = [8, 16], strides = [1, 1]} : vector<8x384xbf16> to vector<8x16xbf16>
    %45 = vector.shape_cast %44 : vector<8x16xbf16> to vector<1x8x16xbf16>
    %46 = tpu.concatenate %31, %33, %35, %37, %39, %41, %43, %45 in 0 : vector<1x8x16xbf16>, vector<1x8x16xbf16>, vector<1x8x16xbf16>, vector<1x8x16xbf16>, vector<1x8x16xbf16>, vector<1x8x16xbf16>, vector<1x8x16xbf16>, vector<1x8x16xbf16> -> vector<8x8x16xbf16>
    %47 = vector.extract_strided_slice %12 {offsets = [0, 256], sizes = [8, 16], strides = [1, 1]} : vector<8x384xbf16> to vector<8x16xbf16>
    %48 = vector.shape_cast %47 : vector<8x16xbf16> to vector<1x8x16xbf16>
    %49 = vector.extract_strided_slice %12 {offsets = [0, 272], sizes = [8, 16], strides = [1, 1]} : vector<8x384xbf16> to vector<8x16xbf16>
    %50 = vector.shape_cast %49 : vector<8x16xbf16> to vector<1x8x16xbf16>
    %51 = vector.extract_strided_slice %12 {offsets = [0, 288], sizes = [8, 16], strides = [1, 1]} : vector<8x384xbf16> to vector<8x16xbf16>
    %52 = vector.shape_cast %51 : vector<8x16xbf16> to vector<1x8x16xbf16>
    %53 = vector.extract_strided_slice %12 {offsets = [0, 304], sizes = [8, 16], strides = [1, 1]} : vector<8x384xbf16> to vector<8x16xbf16>
    %54 = vector.shape_cast %53 : vector<8x16xbf16> to vector<1x8x16xbf16>
    %55 = vector.extract_strided_slice %12 {offsets = [0, 320], sizes = [8, 16], strides = [1, 1]} : vector<8x384xbf16> to vector<8x16xbf16>
    %56 = vector.shape_cast %55 : vector<8x16xbf16> to vector<1x8x16xbf16>
    %57 = vector.extract_strided_slice %12 {offsets = [0, 336], sizes = [8, 16], strides = [1, 1]} : vector<8x384xbf16> to vector<8x16xbf16>
    %58 = vector.shape_cast %57 : vector<8x16xbf16> to vector<1x8x16xbf16>
    %59 = vector.extract_strided_slice %12 {offsets = [0, 352], sizes = [8, 16], strides = [1, 1]} : vector<8x384xbf16> to vector<8x16xbf16>
    %60 = vector.shape_cast %59 : vector<8x16xbf16> to vector<1x8x16xbf16>
    %61 = vector.extract_strided_slice %12 {offsets = [0, 368], sizes = [8, 16], strides = [1, 1]} : vector<8x384xbf16> to vector<8x16xbf16>
    %62 = vector.shape_cast %61 : vector<8x16xbf16> to vector<1x8x16xbf16>
    %63 = tpu.concatenate %48, %50, %52, %54, %56, %58, %60, %62 in 0 : vector<1x8x16xbf16>, vector<1x8x16xbf16>, vector<1x8x16xbf16>, vector<1x8x16xbf16>, vector<1x8x16xbf16>, vector<1x8x16xbf16>, vector<1x8x16xbf16>, vector<1x8x16xbf16> -> vector<8x8x16xbf16>
    "tpu.trace_start"() <{level = 10 : i32, message = "bqd,bkd->bqk"}> : () -> ()
    %cst_8 = arith.constant dense<0.000000e+00> : vector<8x8x8xf32>
    %64 = tpu.matmul %29, %46, %cst_8 {dimension_numbers = #tpu.dot_dimension_numbers<[2], [2], [1], [1], [0, 0, 0, 1, 1, 1], [0], [0]>} : vector<8x8x16xbf16>, vector<8x8x16xbf16>, vector<8x8x8xf32> -> vector<8x8x8xf32>
    "tpu.trace_stop"() : () -> ()
    %cst_9 = arith.constant dense<0xFF800000> : vector<8x8xf32>
    %65 = vector.multi_reduction <maximumf>, %64, %cst_9 [2] : vector<8x8x8xf32> to vector<8x8xf32>
    %66 = vector.shape_cast %65 : vector<8x8xf32> to vector<8x8x1xf32>
    %67 = vector.broadcast %66 : vector<8x8x1xf32> to vector<8x8x8xf32>
    %68 = arith.subf %64, %67 : vector<8x8x8xf32>
    %69 = math.exp %68 : vector<8x8x8xf32>
    %cst_10 = arith.constant dense<0.000000e+00> : vector<8x8xf32>
    %70 = vector.multi_reduction <add>, %69, %cst_10 [2] : vector<8x8x8xf32> to vector<8x8xf32>
    %71 = vector.shape_cast %70 : vector<8x8xf32> to vector<8x8x1xf32>
    %72 = arith.truncf %69 : vector<8x8x8xf32> to vector<8x8x8xbf16>
    "tpu.trace_start"() <{level = 10 : i32, message = "bqk,bkd->bqd"}> : () -> ()
    %cst_11 = arith.constant dense<0.000000e+00> : vector<8x8x16xf32>
    %73 = tpu.matmul %72, %63, %cst_11 {dimension_numbers = #tpu.dot_dimension_numbers<[2], [1], [1], [2], [0, 0, 0, 1, 1, 2], [0], [0]>} : vector<8x8x8xbf16>, vector<8x8x16xbf16>, vector<8x8x16xf32> -> vector<8x8x16xf32>
    "tpu.trace_stop"() : () -> ()
    %74 = tpu.reciprocal %71 {approx = true} : vector<8x8x1xf32> -> vector<8x8x1xf32>
    %75 = vector.broadcast %74 : vector<8x8x1xf32> to vector<8x8x16xf32>
    %76 = arith.mulf %73, %75 : vector<8x8x16xf32>
    %77 = arith.truncf %76 : vector<8x8x16xf32> to vector<8x8x16xbf16>
    %78 = vector.extract_strided_slice %77 {offsets = [0, 0, 0], sizes = [1, 8, 16], strides = [1, 1, 1]} : vector<8x8x16xbf16> to vector<1x8x16xbf16>
    %79 = vector.shape_cast %78 : vector<1x8x16xbf16> to vector<8x16xbf16>
    %80 = vector.extract_strided_slice %77 {offsets = [1, 0, 0], sizes = [1, 8, 16], strides = [1, 1, 1]} : vector<8x8x16xbf16> to vector<1x8x16xbf16>
    %81 = vector.shape_cast %80 : vector<1x8x16xbf16> to vector<8x16xbf16>
    %82 = vector.extract_strided_slice %77 {offsets = [2, 0, 0], sizes = [1, 8, 16], strides = [1, 1, 1]} : vector<8x8x16xbf16> to vector<1x8x16xbf16>
    %83 = vector.shape_cast %82 : vector<1x8x16xbf16> to vector<8x16xbf16>
    %84 = vector.extract_strided_slice %77 {offsets = [3, 0, 0], sizes = [1, 8, 16], strides = [1, 1, 1]} : vector<8x8x16xbf16> to vector<1x8x16xbf16>
    %85 = vector.shape_cast %84 : vector<1x8x16xbf16> to vector<8x16xbf16>
    %86 = vector.extract_strided_slice %77 {offsets = [4, 0, 0], sizes = [1, 8, 16], strides = [1, 1, 1]} : vector<8x8x16xbf16> to vector<1x8x16xbf16>
    %87 = vector.shape_cast %86 : vector<1x8x16xbf16> to vector<8x16xbf16>
    %88 = vector.extract_strided_slice %77 {offsets = [5, 0, 0], sizes = [1, 8, 16], strides = [1, 1, 1]} : vector<8x8x16xbf16> to vector<1x8x16xbf16>
    %89 = vector.shape_cast %88 : vector<1x8x16xbf16> to vector<8x16xbf16>
    %90 = vector.extract_strided_slice %77 {offsets = [6, 0, 0], sizes = [1, 8, 16], strides = [1, 1, 1]} : vector<8x8x16xbf16> to vector<1x8x16xbf16>
    %91 = vector.shape_cast %90 : vector<1x8x16xbf16> to vector<8x16xbf16>
    %92 = vector.extract_strided_slice %77 {offsets = [7, 0, 0], sizes = [1, 8, 16], strides = [1, 1, 1]} : vector<8x8x16xbf16> to vector<1x8x16xbf16>
    %93 = vector.shape_cast %92 : vector<1x8x16xbf16> to vector<8x16xbf16>
    %94 = tpu.concatenate %79, %81, %83, %85, %87, %89, %91, %93 in 1 : vector<8x16xbf16>, vector<8x16xbf16>, vector<8x16xbf16>, vector<8x16xbf16>, vector<8x16xbf16>, vector<8x16xbf16>, vector<8x16xbf16>, vector<8x16xbf16> -> vector<8x128xbf16>
    %c0_12 = arith.constant 0 : index
    %c0_13 = arith.constant 0 : index
    %c0_14 = arith.constant 0 : index
    %95 = vector.load %arg7[%c0_12, %c0_13, %c0_14] : memref<1x128x128xbf16, #tpu.memory_space<vmem>>, vector<1x128x128xbf16>
    %96 = vector.shape_cast %95 : vector<1x128x128xbf16> to vector<128x128xbf16>
    %cst_15 = arith.constant dense<0.000000e+00> : vector<8x128xf32>
    %97 = tpu.matmul %94, %96, %cst_15 {dimension_numbers = #tpu.dot_dimension_numbers<[1], [0], [0], [1], [0, 0, 1, 1], [], []>} : vector<8x128xbf16>, vector<128x128xbf16>, vector<8x128xf32> -> vector<8x128xf32>
    %c0_16 = arith.constant 0 : index
    %c0_17 = arith.constant 0 : index
    %c0_18 = arith.constant 0 : index
    %98 = vector.load %arg8[%c0_16, %c0_17, %c0_18] : memref<1x1x128xf32, #tpu.memory_space<vmem>>, vector<1x1x128xf32>
    %99 = vector.shape_cast %98 : vector<1x1x128xf32> to vector<1x128xf32>
    %100 = vector.broadcast %99 : vector<1x128xf32> to vector<8x128xf32>
    %101 = arith.addf %97, %100 : vector<8x128xf32>
    %102 = arith.addf %3, %101 : vector<8x128xf32>
    %c0_19 = arith.constant 0 : index
    %c0_20 = arith.constant 0 : index
    %c0_21 = arith.constant 0 : index
    %103 = vector.load %arg9[%c0_19, %c0_20, %c0_21] : memref<1x1x128xf32, #tpu.memory_space<vmem>>, vector<1x1x128xf32>
    %104 = vector.shape_cast %103 : vector<1x1x128xf32> to vector<1x128xf32>
    %c0_22 = arith.constant 0 : index
    %c0_23 = arith.constant 0 : index
    %c0_24 = arith.constant 0 : index
    %105 = vector.load %arg10[%c0_22, %c0_23, %c0_24] : memref<1x1x128xf32, #tpu.memory_space<vmem>>, vector<1x1x128xf32>
    %106 = vector.shape_cast %105 : vector<1x1x128xf32> to vector<1x128xf32>
    %cst_25 = arith.constant dense<0.000000e+00> : vector<8xf32>
    %107 = vector.multi_reduction <add>, %102, %cst_25 [1] : vector<8x128xf32> to vector<8xf32>
    %108 = vector.shape_cast %107 : vector<8xf32> to vector<8x1xf32>
    %cst_26 = arith.constant 1.280000e+02 : f32
    %109 = vector.broadcast %cst_26 : f32 to vector<8x1xf32>
    %110 = arith.divf %108, %109 : vector<8x1xf32>
    %111 = vector.broadcast %110 : vector<8x1xf32> to vector<8x128xf32>
    %112 = arith.subf %102, %111 : vector<8x128xf32>
    %113 = arith.mulf %112, %112 : vector<8x128xf32>
    %cst_27 = arith.constant dense<0.000000e+00> : vector<8xf32>
    %114 = vector.multi_reduction <add>, %113, %cst_27 [1] : vector<8x128xf32> to vector<8xf32>
    %115 = vector.shape_cast %114 : vector<8xf32> to vector<8x1xf32>
    %cst_28 = arith.constant 1.280000e+02 : f32
    %116 = vector.broadcast %cst_28 : f32 to vector<8x1xf32>
    %117 = arith.divf %115, %116 : vector<8x1xf32>
    %cst_29 = arith.constant 9.99999974E-6 : f32
    %118 = vector.broadcast %cst_29 : f32 to vector<8x1xf32>
    %119 = arith.addf %117, %118 : vector<8x1xf32>
    %120 = math.rsqrt %119 : vector<8x1xf32>
    %121 = vector.broadcast %120 : vector<8x1xf32> to vector<8x128xf32>
    %122 = arith.mulf %112, %121 : vector<8x128xf32>
    %123 = vector.broadcast %104 : vector<1x128xf32> to vector<8x128xf32>
    %124 = arith.mulf %122, %123 : vector<8x128xf32>
    %125 = vector.broadcast %106 : vector<1x128xf32> to vector<8x128xf32>
    %126 = arith.addf %124, %125 : vector<8x128xf32>
    %127 = arith.truncf %126 : vector<8x128xf32> to vector<8x128xbf16>
    %c0_30 = arith.constant 0 : index
    %c0_31 = arith.constant 0 : index
    %c0_32 = arith.constant 0 : index
    %128 = vector.load %arg11[%c0_30, %c0_31, %c0_32] : memref<1x128x256xbf16, #tpu.memory_space<vmem>>, vector<1x128x256xbf16>
    %129 = vector.shape_cast %128 : vector<1x128x256xbf16> to vector<128x256xbf16>
    %cst_33 = arith.constant dense<0.000000e+00> : vector<8x256xf32>
    %130 = tpu.matmul %127, %129, %cst_33 {dimension_numbers = #tpu.dot_dimension_numbers<[1], [0], [0], [1], [0, 0, 1, 1], [], []>} : vector<8x128xbf16>, vector<128x256xbf16>, vector<8x256xf32> -> vector<8x256xf32>
    %c0_34 = arith.constant 0 : index
    %c0_35 = arith.constant 0 : index
    %c0_36 = arith.constant 0 : index
    %131 = vector.load %arg12[%c0_34, %c0_35, %c0_36] : memref<1x1x256xf32, #tpu.memory_space<vmem>>, vector<1x1x256xf32>
    %132 = vector.shape_cast %131 : vector<1x1x256xf32> to vector<1x256xf32>
    %133 = vector.broadcast %132 : vector<1x256xf32> to vector<8x256xf32>
    %134 = arith.addf %130, %133 : vector<8x256xf32>
    %cst_37 = arith.constant 0.000000e+00 : f32
    %135 = vector.broadcast %cst_37 : f32 to vector<8x256xf32>
    %136 = arith.maximumf %134, %135 : vector<8x256xf32>
    %137 = arith.truncf %136 : vector<8x256xf32> to vector<8x256xbf16>
    %c0_38 = arith.constant 0 : index
    %c0_39 = arith.constant 0 : index
    %c0_40 = arith.constant 0 : index
    %138 = vector.load %arg13[%c0_38, %c0_39, %c0_40] : memref<1x256x128xbf16, #tpu.memory_space<vmem>>, vector<1x256x128xbf16>
    %139 = vector.shape_cast %138 : vector<1x256x128xbf16> to vector<256x128xbf16>
    %cst_41 = arith.constant dense<0.000000e+00> : vector<8x128xf32>
    %140 = tpu.matmul %137, %139, %cst_41 {dimension_numbers = #tpu.dot_dimension_numbers<[1], [0], [0], [1], [0, 0, 1, 1], [], []>} : vector<8x256xbf16>, vector<256x128xbf16>, vector<8x128xf32> -> vector<8x128xf32>
    %c0_42 = arith.constant 0 : index
    %c0_43 = arith.constant 0 : index
    %c0_44 = arith.constant 0 : index
    %141 = vector.load %arg14[%c0_42, %c0_43, %c0_44] : memref<1x1x128xf32, #tpu.memory_space<vmem>>, vector<1x1x128xf32>
    %142 = vector.shape_cast %141 : vector<1x1x128xf32> to vector<1x128xf32>
    %143 = vector.broadcast %142 : vector<1x128xf32> to vector<8x128xf32>
    %144 = arith.addf %140, %143 : vector<8x128xf32>
    %145 = arith.addf %126, %144 : vector<8x128xf32>
    %c0_45 = arith.constant 0 : index
    %c0_46 = arith.constant 0 : index
    %c0_47 = arith.constant 0 : index
    %146 = vector.load %arg15[%c0_45, %c0_46, %c0_47] : memref<1x1x128xf32, #tpu.memory_space<vmem>>, vector<1x1x128xf32>
    %147 = vector.shape_cast %146 : vector<1x1x128xf32> to vector<1x128xf32>
    %c0_48 = arith.constant 0 : index
    %c0_49 = arith.constant 0 : index
    %c0_50 = arith.constant 0 : index
    %148 = vector.load %arg16[%c0_48, %c0_49, %c0_50] : memref<1x1x128xf32, #tpu.memory_space<vmem>>, vector<1x1x128xf32>
    %149 = vector.shape_cast %148 : vector<1x1x128xf32> to vector<1x128xf32>
    %cst_51 = arith.constant dense<0.000000e+00> : vector<8xf32>
    %150 = vector.multi_reduction <add>, %145, %cst_51 [1] : vector<8x128xf32> to vector<8xf32>
    %151 = vector.shape_cast %150 : vector<8xf32> to vector<8x1xf32>
    %cst_52 = arith.constant 1.280000e+02 : f32
    %152 = vector.broadcast %cst_52 : f32 to vector<8x1xf32>
    %153 = arith.divf %151, %152 : vector<8x1xf32>
    %154 = vector.broadcast %153 : vector<8x1xf32> to vector<8x128xf32>
    %155 = arith.subf %145, %154 : vector<8x128xf32>
    %156 = arith.mulf %155, %155 : vector<8x128xf32>
    %cst_53 = arith.constant dense<0.000000e+00> : vector<8xf32>
    %157 = vector.multi_reduction <add>, %156, %cst_53 [1] : vector<8x128xf32> to vector<8xf32>
    %158 = vector.shape_cast %157 : vector<8xf32> to vector<8x1xf32>
    %cst_54 = arith.constant 1.280000e+02 : f32
    %159 = vector.broadcast %cst_54 : f32 to vector<8x1xf32>
    %160 = arith.divf %158, %159 : vector<8x1xf32>
    %cst_55 = arith.constant 9.99999974E-6 : f32
    %161 = vector.broadcast %cst_55 : f32 to vector<8x1xf32>
    %162 = arith.addf %160, %161 : vector<8x1xf32>
    %163 = math.rsqrt %162 : vector<8x1xf32>
    %164 = vector.broadcast %163 : vector<8x1xf32> to vector<8x128xf32>
    %165 = arith.mulf %155, %164 : vector<8x128xf32>
    %166 = vector.broadcast %147 : vector<1x128xf32> to vector<8x128xf32>
    %167 = arith.mulf %165, %166 : vector<8x128xf32>
    %168 = vector.broadcast %149 : vector<1x128xf32> to vector<8x128xf32>
    %169 = arith.addf %167, %168 : vector<8x128xf32>
    %c0_56 = arith.constant 0 : index
    %c0_57 = arith.constant 0 : index
    %170 = vector.load %arg18[%c0_56, %c0_57] : memref<8x128xf32, #tpu.memory_space<vmem>>, vector<8x128xf32>
    tpu.vector_store %arg18[%c0_56, %c0_57], %169 {strides = array<i32>} : memref<8x128xf32, #tpu.memory_space<vmem>>, vector<8x128xf32>,
    %c1_i32 = arith.constant 1 : i32
    %171 = arith.cmpi eq, %arg1, %c1_i32 : i32
    %172 = arith.extui %171 : i1 to i32
    %c0_i32_58 = arith.constant 0 : i32
    %173 = arith.cmpi ne, %172, %c0_i32_58 : i32
    scf.if %173 {
      %174 = arith.truncf %169 : vector<8x128xf32> to vector<8x128xbf16>
      %c0_59 = arith.constant 0 : index
      %c0_60 = arith.constant 0 : index
      %175 = vector.load %arg3[%c0_59, %c0_60] : memref<128x128xbf16, #tpu.memory_space<vmem>>, vector<128x128xbf16>
      %cst_61 = arith.constant dense<0.000000e+00> : vector<8x128xf32>
      %176 = tpu.matmul %174, %175, %cst_61 {dimension_numbers = #tpu.dot_dimension_numbers<[1], [0], [0], [1], [0, 0, 1, 1], [], []>} : vector<8x128xbf16>, vector<128x128xbf16>, vector<8x128xf32> -> vector<8x128xf32>
      %c0_62 = arith.constant 0 : index
      %c0_63 = arith.constant 0 : index
      %177 = vector.load %arg4[%c0_62, %c0_63] : memref<1x128xf32, #tpu.memory_space<vmem>>, vector<1x128xf32>
      %178 = vector.broadcast %177 : vector<1x128xf32> to vector<8x128xf32>
      %179 = arith.addf %176, %178 : vector<8x128xf32>
      %c0_64 = arith.constant 0 : index
      %c0_65 = arith.constant 0 : index
      %180 = vector.load %arg17[%c0_64, %c0_65] : memref<8x128xf32, #tpu.memory_space<vmem>>, vector<8x128xf32>
      tpu.vector_store %arg17[%c0_64, %c0_65], %179 {strides = array<i32>} : memref<8x128xf32, #tpu.memory_space<vmem>>, vector<8x128xf32>,
    } else {
    }
    return
  }
  func.func @transform_0(%arg0: i32, %arg1: i32) -> (i32, i32) {
    %c0_i32 = arith.constant 0 : i32
    %c0_i32_0 = arith.constant 0 : i32
    return %arg0, %c0_i32 : i32, i32
  }
  func.func @transform_1(%arg0: i32, %arg1: i32) -> (i32, i32) {
    %c0_i32 = arith.constant 0 : i32
    %c0_i32_0 = arith.constant 0 : i32
    %c0_i32_1 = arith.constant 0 : i32
    return %c0_i32, %c0_i32_0 : i32, i32
  }
  func.func @transform_2(%arg0: i32, %arg1: i32) -> (i32, i32) {
    %c0_i32 = arith.constant 0 : i32
    %c0_i32_0 = arith.constant 0 : i32
    %c0_i32_1 = arith.constant 0 : i32
    return %c0_i32, %c0_i32_0 : i32, i32
  }
  func.func @transform_3(%arg0: i32, %arg1: i32) -> (i32, i32, i32) {
    %c0_i32 = arith.constant 0 : i32
    %c0_i32_0 = arith.constant 0 : i32
    %c0_i32_1 = arith.constant 0 : i32
    return %arg1, %c0_i32, %c0_i32_0 : i32, i32, i32
  }
  func.func @transform_4(%arg0: i32, %arg1: i32) -> (i32, i32, i32) {
    %c0_i32 = arith.constant 0 : i32
    %c0_i32_0 = arith.constant 0 : i32
    %c0_i32_1 = arith.constant 0 : i32
    return %arg1, %c0_i32, %c0_i32_0 : i32, i32, i32
  }
  func.func @transform_5(%arg0: i32, %arg1: i32) -> (i32, i32, i32) {
    %c0_i32 = arith.constant 0 : i32
    %c0_i32_0 = arith.constant 0 : i32
    %c0_i32_1 = arith.constant 0 : i32
    return %arg1, %c0_i32, %c0_i32_0 : i32, i32, i32
  }
  func.func @transform_6(%arg0: i32, %arg1: i32) -> (i32, i32, i32) {
    %c0_i32 = arith.constant 0 : i32
    %c0_i32_0 = arith.constant 0 : i32
    %c0_i32_1 = arith.constant 0 : i32
    return %arg1, %c0_i32, %c0_i32_0 : i32, i32, i32
  }
  func.func @transform_7(%arg0: i32, %arg1: i32) -> (i32, i32, i32) {
    %c0_i32 = arith.constant 0 : i32
    %c0_i32_0 = arith.constant 0 : i32
    %c0_i32_1 = arith.constant 0 : i32
    return %arg1, %c0_i32, %c0_i32_0 : i32, i32, i32
  }
  func.func @transform_8(%arg0: i32, %arg1: i32) -> (i32, i32, i32) {
    %c0_i32 = arith.constant 0 : i32
    %c0_i32_0 = arith.constant 0 : i32
    %c0_i32_1 = arith.constant 0 : i32
    return %arg1, %c0_i32, %c0_i32_0 : i32, i32, i32
  }
  func.func @transform_9(%arg0: i32, %arg1: i32) -> (i32, i32, i32) {
    %c0_i32 = arith.constant 0 : i32
    %c0_i32_0 = arith.constant 0 : i32
    %c0_i32_1 = arith.constant 0 : i32
    return %arg1, %c0_i32, %c0_i32_0 : i32, i32, i32
  }
  func.func @transform_10(%arg0: i32, %arg1: i32) -> (i32, i32, i32) {
    %c0_i32 = arith.constant 0 : i32
    %c0_i32_0 = arith.constant 0 : i32
    %c0_i32_1 = arith.constant 0 : i32
    return %arg1, %c0_i32, %c0_i32_0 : i32, i32, i32
  }
  func.func @transform_11(%arg0: i32, %arg1: i32) -> (i32, i32, i32) {
    %c0_i32 = arith.constant 0 : i32
    %c0_i32_0 = arith.constant 0 : i32
    %c0_i32_1 = arith.constant 0 : i32
    return %arg1, %c0_i32, %c0_i32_0 : i32, i32, i32
  }
  func.func @transform_12(%arg0: i32, %arg1: i32) -> (i32, i32, i32) {
    %c0_i32 = arith.constant 0 : i32
    %c0_i32_0 = arith.constant 0 : i32
    %c0_i32_1 = arith.constant 0 : i32
    return %arg1, %c0_i32, %c0_i32_0 : i32, i32, i32
  }
  func.func @transform_13(%arg0: i32, %arg1: i32) -> (i32, i32, i32) {
    %c0_i32 = arith.constant 0 : i32
    %c0_i32_0 = arith.constant 0 : i32
    %c0_i32_1 = arith.constant 0 : i32
    return %arg1, %c0_i32, %c0_i32_0 : i32, i32, i32
  }
  func.func @transform_14(%arg0: i32, %arg1: i32) -> (i32, i32, i32) {
    %c0_i32 = arith.constant 0 : i32
    %c0_i32_0 = arith.constant 0 : i32
    %c0_i32_1 = arith.constant 0 : i32
    return %arg1, %c0_i32, %c0_i32_0 : i32, i32, i32
  }
  func.func @transform_15(%arg0: i32, %arg1: i32) -> (i32, i32) {
    %c0_i32 = arith.constant 0 : i32
    %c0_i32_0 = arith.constant 0 : i32
    return %arg0, %c0_i32 : i32, i32
  }
}

</mosaic_0001>

<bundles_post_ra>
// kernel: evaluation_transformer_forward.1
= control target key start
LH: loop header
LB: loop body
LE: loop exit
PB: predicated region body
PF: predicated region fallthrough
CT: control target
= control target key end

     0   :  { %s3370_s18 = smov 0   ;;  %s3372_s19 = smov 0   ;;  %s3813_s0 = inlined_call_operand.vmem [shape: f32[16,128], index: 0, kind: input, shape index: {}]   ;;  %s3814_s1 = inlined_call_operand.vmem [shape: bf16[128,128], index: 1, kind: input, shape index: {}]   ;;  %s3815_s2 = inlined_call_operand.vmem [shape: f32[1,128], index: 2, kind: input, shape index: {}]   ;;  %s3816_s3 = inlined_call_operand.vmem [shape: bf16[2,128,384], index: 3, kind: input, shape index: {}]   ;;  %s3817_s4 = inlined_call_operand.vmem [shape: f32[2,1,384], index: 4, kind: input, shape index: {}]   ;;  %s3818_s5 = inlined_call_operand.vmem [shape: bf16[2,128,128], index: 5, kind: input, shape index: {}]   ;;  %s3819_s6 = inlined_call_operand.vmem [shape: f32[2,1,128], index: 6, kind: input, shape index: {}]   ;;  %s3820_s7 = inlined_call_operand.vmem [shape: f32[2,1,128], index: 7, kind: input, shape index: {}]   ;;  %s3821_s8 = inlined_call_operand.vmem [shape: f32[2,1,128], index: 8, kind: input, shape index: {}]   ;;  %s3822_s9 = inlined_call_operand.vmem [shape: bf16[2,128,256], index: 9, kind: input, shape index: {}]   ;;  %s3823_s10 = inlined_call_operand.vmem [shape: f32[2,1,256], index: 10, kind: input, shape index: {}]   ;;  %s3824_s11 = inlined_call_operand.vmem [shape: bf16[2,256,128], index: 11, kind: input, shape index: {}]   ;;  %s3825_s12 = inlined_call_operand.vmem [shape: f32[2,1,128], index: 12, kind: input, shape index: {}]   ;;  %s3826_s13 = inlined_call_operand.vmem [shape: f32[2,1,128], index: 13, kind: input, shape index: {}]   ;;  %s3827_s14 = inlined_call_operand.vmem [shape: f32[2,1,128], index: 14, kind: input, shape index: {}]   ;;  %s3828_s15 = inlined_call_operand.vmem [shape: f32[16,128], index: 15, kind: output, shape index: {}]  }
   0x1   :  { %3834 = sst [smem:[#allocation9_spill]] %s3813_s0  ;;  %s3374_s20 = smov 0  }
   0x2   :  { %3835 = sst [smem:[#allocation10_spill]] %s3814_s1  ;;  %s3376_s21 = smov 0  }
   0x3   :  { %3836 = sst [smem:[#allocation11_spill]] %s3815_s2  ;;  %s3378_s22 = smov 0  }
   0x4   :  { %3837 = sst [smem:[#allocation12_spill]] %s3816_s3 }
   0x5   :  { %3838 = sst [smem:[#allocation13_spill]] %s3817_s4 }
   0x6   :  { %3839 = sst [smem:[#allocation14_spill]] %s3818_s5 }
   0x7   :  { %3840 = sst [smem:[#allocation15_spill]] %s3821_s8 }
   0x8   :  { %3841 = sst [smem:[#allocation16_spill]] %s3822_s9 }
   0x9   :  { %3842 = sst [smem:[#allocation17_spill]] %s3823_s10 }
   0xa   :  { %3843 = sst [smem:[#allocation18_spill]] %s3827_s14 }
   0xb   :  { %3844 = sst [smem:[#allocation19_spill]] %s3828_s15 }
   0xc LB: > { %3845 = sst [smem:[#allocation3_spill]] %s3260_s18  ;;  %s34_s23 = sadd.s32 1, %s3268_s20  ;;  %s3276_s22 = sphi %s3378_s22, %s25_s22   ;;  %s3272_s21 = sphi %s3376_s21, %s3873_s21   ;;  %s3268_s20 = sphi %s3374_s20, %s3872_s20   ;;  %s3264_s19 = sphi %s3372_s19, %s3871_s19   ;;  %s3260_s18 = sphi %s3370_s18, %s3870_s18  }
   0xd   : > { %3846 = sst [smem:[#allocation4_spill]] %s3268_s20  ;;  %s37_s24 = sadd.s32 1, %s3272_s21 }
   0xe   : > { %3847 = sst [smem:[#allocation5_spill]] %s3272_s21  ;;  %p35_p0 = scmp.ge.s32.totalorder %s34_s23, 2 }
   0xf   : > { %3848 = sst [smem:[#allocation6_spill]] %s3276_s22  ;;  %p2710_p1 = scmp.ge.s32.totalorder %s3276_s22, 1 }
  0x10   : > { %p554_p2 = scmp.lt.s32.totalorder %s3276_s22, 5  ;;  %s3875_s23 = smov (%p35_p0, %s34_s23), 0 }
  0x11   : > { %3849 = sst [smem:[#allocation7_spill]] %s3875_s23  ;;  %s3877_s24 = smov (!%p35_p0, %s37_s24), %s3272_s21 }
  0x12   : > { %p555_p3 = pnand %p2710_p1, %p554_p2  ;;  %p39_p4 = scmp.ge.s32.totalorder %s3877_s24, 2 }
  0x13   : > { %p646_p5 = scmp.lt.s32.totalorder (!%p555_p3), %s3264_s19, 1  ;;  %p650_p6 = scmp.lt.s32.totalorder (!%p555_p3), %s3260_s18, 1 }
  0x14   : > { %s3879_s24 = smov (%p39_p4, %s3877_s24), 0  ;;  %558 = sbr.rel (%p555_p3) target bundleno = 2704 (0xa90), region = 80 }
  0x15   : > { %3850 = sst [smem:[#allocation8_spill]] %s3879_s24  ;;  %s3851_s0 = sld [smem:[#allocation9_spill]] (!%p555_p3) }
  0x16   : > { %s3852_s3 = sld [smem:[#allocation12_spill]] (!%p555_p3)  ;;  %s3853_s5 = sld [smem:[#allocation14_spill]] (!%p555_p3) }
  0x17   : > { %s3854_s4 = sld [smem:[#allocation13_spill]] (!%p555_p3)  ;;  %s3856_s9 = sld [smem:[#allocation16_spill]] (!%p555_p3) }
  0x18   : > { %s3857_s10 = sld [smem:[#allocation17_spill]] (!%p555_p3) }
  0x1b   : > { %s3881_s19 = smov (!%p646_p5, %s3264_s19), 1 }
  0x1c   : > { %s3404_s25 = scalar_select %p650_p6, %s3260_s18, 1 }
  0x1d   : > { %s2711_s26 = sshll.u32 %s3881_s19, 3  ;;  %s3859_s19 = sld [smem:[#allocation19_spill]] }
  0x1e   : > { %s649_s29 = scalar_lea.vmem %s3851_s0, %s2711_s26  ;;  %s3060_s30 = smul.u32 192, %s3404_s25 }
  0x1f   : > { %s3061_s16 = smul.u32 3, %s3404_s25  ;;  %s2820_s17 = sshll.u32 %s3404_s25, 6 }
  0x20   : > { %s3415_s21 = scalar_lea.vmem %s3852_s3, %s3060_s30  ;;  %s3420_s2 = scalar_lea.vmem %s3853_s5, %s2820_s17 }
  0x21   : > { %s3425_s27 = scalar_lea.vmem %s3854_s4, %s3061_s16  ;;  %s2821_s20 = sshll.u32 %s3404_s25, 7 }
  0x22   : > { %s2717_s22 = sshll.u32 %s3404_s25, 1  ;;  %s3444_s1 = scalar_lea.vmem %s3856_s9, %s2821_s20 }
  0x23   : > { %s3449_s0 = scalar_lea.vmem %s3857_s10, %s2717_s22  ;;  %s3454_s14 = scalar_lea.vmem %s3824_s11, %s2821_s20 }
  0x24   : > { %s689_s30 = scalar_lea.vmem %s3825_s12, %s3404_s25  ;;  %s692_s5 = scalar_lea.vmem %s3826_s13, %s3404_s25 }
  0x25   : > { %s3858_s9 = sld [smem:[#allocation18_spill]]  ;;  %s3471_s10 = scalar_lea.vmem %s3859_s19, %s2711_s26 }
  0x26   : > { %s3860_s18 = sld [smem:[#allocation3_spill]] }
  0x2b   : > { %s695_s8 = scalar_lea.vmem %s3858_s9, %s3404_s25 }
  0x2c   : > { %p2721_p7 = scmp.ne.s32.totalorder %s3860_s18, 0 }
  0x2d   : > { %v705_v0 = vld [vmem:[%s649_s29] sm:$0xff] (!%p2721_p7) }
  0x2e   : > { %704 = sbr.rel (%p2721_p7) target bundleno = 53 (0x35), region = 84  ;;  %706 = vst [vmem:[#allocation2] sm:$0xff] (!%p2721_p7), %v705_v0 }
  0x35 PF: > { %v3114_v1 = vld [vmem:[%s3415_s21 + $0x4] ss:$12 sps:$4 sm:$0xff]   ;;  %v3116_v2 = vld [vmem:[%s3415_s21] ss:$12 sps:$4 sm:$0xff]   ;;  %v3278_v3 = vmov 0   ;;  %v3279_v4 = vmov 0.0   ;;  %v743_v29 = vlaneseq  ;;  %s3861_s20 = scalar_lea.vmem %s3819_s6, %s3404_s25  ;;  %s3862_s15 = scalar_lea.vmem %s3820_s7, %s3404_s25 }
  0x36   : > { %918 = vmatprep.mubr.bf16.mxu0 %v3278_v3  ;;  %2904 = vmatprep.subr.bf16.mxu1 %v3279_v4  ;;  %v3117_v5 = vld [vmem:[%s3415_s21 + $0x1c] ss:$12 sps:$4 sm:$0xff]   ;;  %vm3280_vm0 = vmmov 0   ;;  %v3119_v6 = vld [vmem:[%s3415_s21 + $0x18] ss:$12 sps:$4 sm:$0xff]   ;;  %vm1015_vm1 = vcmask 130048  }
  0x37   : > { %886 = vmatprep.subr.bf16.mxu0 %v3114_v1  ;;  %2920 = vmatprep.mubr.msk.bf16.mxu1 %vm3280_vm0, %v3279_v4  ;;  %v3120_v7 = vld [vmem:[%s3415_s21 + $0x34] ss:$12 sps:$4 sm:$0xff]   ;;  %v3122_v8 = vld [vmem:[%s3415_s21 + $0x30] ss:$12 sps:$4 sm:$0xff]   ;;  %v3123_v9 = vld [vmem:[%s3415_s21 + $0x4c] ss:$12 sps:$4 sm:$0xff]  }
  0x38   : > { %887 = vmatpush1.bf16.msra.mxu0 %v3116_v2  ;;  %v3125_v10 = vld [vmem:[%s3415_s21 + $0x48] ss:$12 sps:$4 sm:$0xff]   ;;  %v3126_v12 = vld [vmem:[%s3415_s21 + $0x64] ss:$12 sps:$4 sm:$0xff]   ;;  %v3139_v13 = vld [vmem:[%s3415_s21 + $0x20] ss:$12 sps:$4 sm:$0xff]  }
  0x39   : > { %888 = vmatprep.subr.bf16.mxu0 %v3117_v5  ;;  %v3138_v11 = vld [vmem:[%s3415_s21 + $0x8] ss:$12 sps:$4 sm:$0xff]   ;;  %v3128_v14 = vld [vmem:[%s3415_s21 + $0x60] ss:$12 sps:$4 sm:$0xff]   ;;  %v3131_v16 = vld [vmem:[%s3415_s21 + $0x78] ss:$12 sps:$4 sm:$0xff]  }
  0x3a   : > { %2905 = vmatpush3.bf16.msra.mxu1 %v3138_v11  ;;  %v3129_v15 = vld [vmem:[%s3415_s21 + $0x7c] ss:$12 sps:$4 sm:$0xff]   ;;  %v3140_v17 = vld [vmem:[%s3415_s21 + $0x38] ss:$12 sps:$4 sm:$0xff]   ;;  %v3132_v18 = vld [vmem:[%s3415_s21 + $0x94] ss:$12 sps:$4 sm:$0xff]  }
  0x3b   : > { %2906 = vmatprep.subr.bf16.mxu1 %v3279_v4  ;;  %v3141_v19 = vld [vmem:[%s3415_s21 + $0x50] ss:$12 sps:$4 sm:$0xff]   ;;  %v3135_v21 = vld [vmem:[%s3415_s21 + $0xac] ss:$12 sps:$4 sm:$0xff]   ;;  %v3142_v22 = vld [vmem:[%s3415_s21 + $0x68] ss:$12 sps:$4 sm:$0xff]  }
  0x3c   : > { %889 = vmatpush1.bf16.msra.mxu0 %v3119_v6  ;;  %v3134_v20 = vld [vmem:[%s3415_s21 + $0x90] ss:$12 sps:$4 sm:$0xff]   ;;  %v3137_v23 = vld [vmem:[%s3415_s21 + $0xa8] ss:$12 sps:$4 sm:$0xff]   ;;  %v3502_v24 = vld [vmem:[#allocation2] sm:$0xff]  ;;  %v3519_v30 = vshrl.u32 %v743_v29, 7 }
  0x3d   : > { %890 = vmatprep.subr.bf16.mxu0 %v3120_v7  ;;  %v3143_v25 = vld [vmem:[%s3415_s21 + $0x80] ss:$12 sps:$4 sm:$0xff]   ;;  %v708_v26 = vpack.c.bf16 %v3502_v24, %v3502_v24  ;;  %v3144_v27 = vld [vmem:[%s3415_s21 + $0x98] ss:$12 sps:$4 sm:$0xff]   ;;  %v3145_v28 = vld [vmem:[%s3415_s21 + $0xb0] ss:$12 sps:$4 sm:$0xff]  }
  0x3e   : > { %2907 = vmatpush3.bf16.msra.mxu1 %v3139_v13  ;;  %v749_v31 = vsub.s32 1, %v3519_v30  ;;  %v741_v32 = vld [vmem:[%s3425_s27] sm:$0x7]  ;;  %v745_v33 = vsub.s32 0, %v3519_v30  ;;  %s3281_s3 = smov 96   ;;  %s3282_s4 = smov 112  }
  0x3f   : > { %2908 = vmatprep.subr.bf16.mxu1 %v3279_v4  ;;  %s3283_s9 = smov 64   ;;  %s3284_s21 = smov 80   ;;  %v753_v45 = vsub.s32 2, %v3519_v30  ;;  %vm1468_vm2 = vcmask 1043456   ;;  %vm1384_vm3 = vcmask 64512   ;;  %vm1882_vm4 = vcmask 261120  }
  0x40   : > { %891 = vmatpush1.bf16.msra.mxu0 %v3122_v8  ;;  %v750_v34 = vrot.slane %v741_v32, %v749_v31  ;;  %v746_v35 = vrot.slane %v741_v32, %v745_v33  ;;  %s3285_s26 = smov 48   ;;  %s3286_s29 = smov 32   ;;  %vm1885_vm5 = vcmask 392192   ;;  %vm1888_vm6 = vcmask 523264  }
  0x41   : > { %892 = vmatprep.subr.bf16.mxu0 %v3123_v9  ;;  %s3287_s27 = smov 16   ;;  %v754_v48 = vrot.slane %v741_v32, %v753_v45  ;;  %vm1891_vm7 = vcmask 654336   ;;  %vm1894_vm8 = vcmask 785408   ;;  %vm1897_vm9 = vcmask 916480   ;;  %s3863_s16 = sld [smem:[#allocation15_spill]] }
  0x42   : > { %2909 = vmatpush3.bf16.msra.mxu1 %v3140_v17 }
  0x43   : > { %2910 = vmatprep.subr.bf16.mxu1 %v3279_v4 }
  0x44   : > { %893 = vmatpush1.bf16.msra.mxu0 %v3125_v10 }
  0x45   : > { %894 = vmatprep.subr.bf16.mxu0 %v3126_v12 }
  0x46   : > { %2911 = vmatpush3.bf16.msra.mxu1 %v3141_v19 }
  0x47   : > { %2912 = vmatprep.subr.bf16.mxu1 %v3279_v4  ;;  %s3864_s22 = scalar_lea.vmem %s3863_s16, %s3404_s25 }
  0x48   : > { %895 = vmatpush1.bf16.msra.mxu0 %v3128_v14 }
  0x49   : > { %896 = vmatprep.subr.bf16.mxu0 %v3129_v15 }
  0x4a   : > { %2913 = vmatpush3.bf16.msra.mxu1 %v3142_v22 }
  0x4b   : > { %2914 = vmatprep.subr.bf16.mxu1 %v3279_v4 }
  0x4c   : > { %897 = vmatpush1.bf16.msra.mxu0 %v3131_v16 }
  0x4d   : > { %898 = vmatprep.subr.bf16.mxu0 %v3132_v18 }
  0x4e   : > { %2915 = vmatpush3.bf16.msra.mxu1 %v3143_v25 }
  0x4f   : > { %2916 = vmatprep.subr.bf16.mxu1 %v3279_v4 }
  0x50   : > { %899 = vmatpush1.bf16.msra.mxu0 %v3134_v20 }
  0x51   : > { %900 = vmatprep.subr.bf16.mxu0 %v3135_v21 }
  0x52   : > { %2917 = vmatpush3.bf16.msra.mxu1 %v3144_v27 }
  0x53   : > { %2918 = vmatprep.subr.bf16.mxu1 %v3279_v4 }
  0x54   : > { %901 = vmatpush1.bf16.msra.mxu0 %v3137_v23 }
  0x55   : > { %2948 = vmatprep.subr.bf16.mxu0 %v3279_v4 }
  0x56   : > { %2919 = vmatpush3.bf16.msra.mxu1 %v3145_v28 }
  0x57   : > { %919 = vmatmul.mubr.bf16.vlgmr.msra.gmra.mrb[0].mxu0 %v708_v26  ;;  %2924 = vmatprep.subr.bf16.mxu1 %v3279_v4 }
  0x58   : > { %2950 = vmatprep.mubr.msk.bf16.mxu0 %vm3280_vm0, %v3279_v4 }
  0x59   : > { %2921 = vmatmul.mubr.bf16.vlgmr.msra.gmra.mrb[0].mxu1 %v708_v26 }
  0x5a   : > { %2926 = vmatprep.mubr.msk.bf16.mxu1 %vm3280_vm0, %v3279_v4 }
 0x12a   : > { %v920_v36 = vpop.f32.mrb[0].mxu0 }
 0x12b   : > { %v922_v37 = vpop.f32.mrb[1].mxu0  ;;  %v921_v41 = vadd.f32 %v920_v36, %v746_v35 }
 0x12c   : > { %v923_v38 = vadd.f32 %v922_v37, %v750_v34  ;;  %v924_v39 = vpop.f32.mrb[2].mxu0  ;;  %v961_v46 = vpop.f32.mrb[0].mxu1 }
 0x12d   : > { %v925_v40 = vpop.f32.mrb[3].mxu0  ;;  %v967_v44 = vpack.c.bf16 %v921_v41, %v921_v41  ;;  %v2922_v47 = vpop.f32.mrb[1].mxu1  ;;  %v962_v51 = vadd.f32 %v961_v46, %v754_v48 }
 0x12e   : > { %v968_v42 = vpack.c.bf16 %v923_v38, %v923_v38  ;;  %v964_v49 = vpop.f32.mrb[2].mxu1 }
 0x12f   : > { %v2923_v50 = vpop.f32.mrb[3].mxu1  ;;  %v3548_v52 = vpack.c.bf16 %v962_v51, %v962_v51 }
 0x130   : > { %988 = vrot.lane.b32.xlu1 %v968_v42, %s3281_s3  ;;  %986 = vrot.lane.b32.xlu0 %v968_v42, %s3282_s4  ;;  %v1020_v43 = vsel %vm1015_vm1, %v968_v42, 0 }
 0x131   : > { %2925 = vmatpush3.bf16.xpose.msra.mxu1 %v1020_v43  ;;  %v1470_v8 = vsel %vm1468_vm2, %v3548_v52, 0 }
 0x132   : > { %2930 = vmatprep.subr.bf16.mxu1 %v3279_v4 }
 0x134   : > { %973 = vrot.lane.b32.xlu1 %v967_v44, %s3281_s3  ;;  %971 = vrot.lane.b32.xlu0 %v967_v44, %s3282_s4 }
 0x138   : > { %992 = vrot.lane.b32.xlu1 %v968_v42, %s3283_s9  ;;  %990 = vrot.lane.b32.xlu0 %v968_v42, %s3284_s21 }
 0x139   : > { %2927 = vmatmul.mubr.msk.bf16.vlgmr.msra.gmra.mrb[4].mxu1 %vm1015_vm1, %v967_v44 }
 0x13a   : > { %2932 = vmatprep.mubr.msk.bf16.mxu1 %vm3280_vm0, %v3279_v4 }
 0x13c   : > { %994 = vrot.lane.b32.xlu1 %v968_v42, %s3285_s26  ;;  %975 = vrot.lane.b32.xlu0 %v967_v44, %s3284_s21 }
 0x140   : > { %996 = vrot.lane.b32.xlu1 %v968_v42, %s3286_s29  ;;  %977 = vrot.lane.b32.xlu0 %v967_v44, %s3283_s9 }
 0x144   : > { %998 = vrot.lane.b32.xlu1 %v968_v42, %s3287_s27  ;;  %979 = vrot.lane.b32.xlu0 %v967_v44, %s3285_s26 }
 0x148   : > { %983 = vrot.lane.b32.xlu1 %v967_v44, %s3287_s27  ;;  %981 = vrot.lane.b32.xlu0 %v967_v44, %s3286_s29 }
 0x14c   : > { %1003 = vrot.lane.b32.xlu0 %v3548_v52, %s3281_s3  ;;  %1001 = vrot.lane.b32.xlu1 %v3548_v52, %s3282_s4 }
 0x150   : > { %1005 = vrot.lane.b32.xlu1 %v3548_v52, %s3284_s21 }
 0x1a2   : > { %v989_v53 = vpop.permute.xlu1 %988  ;;  %v987_v54 = vpop.permute.xlu0 %986 }
 0x1a3   : > { %v1066_v55 = vsel %vm1015_vm1, %v987_v54, 0  ;;  %v1112_v60 = vsel %vm1015_vm1, %v989_v53, 0 }
 0x1a4   : > { %2931 = vmatpush3.bf16.xpose.msra.mxu1 %v1066_v55 }
 0x1a5   : > { %2936 = vmatprep.subr.bf16.mxu1 %v3279_v4 }
 0x1a6   : > { %v974_v56 = vpop.permute.xlu1 %973  ;;  %v972_v57 = vpop.permute.xlu0 %971 }
 0x1aa   : > { %v993_v58 = vpop.permute.xlu1 %992  ;;  %v991_v59 = vpop.permute.xlu0 %990 }
 0x1ab   : > { %v1204_v61 = vsel %vm1015_vm1, %v993_v58, 0  ;;  %2933 = vmatmul.mubr.msk.bf16.vlgmr.msra.gmra.mrb[8].mxu1 %vm1015_vm1, %v972_v57  ;;  %v1158_v2 = vsel %vm1015_vm1, %v991_v59, 0 }
 0x1ac   : > { %2937 = vmatpush3.bf16.xpose.msra.mxu1 %v1112_v60  ;;  %2949 = vmatpush3.bf16.xpose.msra.mxu0 %v1204_v61 }
 0x1ad   : > { %2938 = vmatprep.mubr.msk.bf16.mxu1 %vm3280_vm0, %v3279_v4  ;;  %2942 = vmatprep.subr.bf16.mxu1 %v3279_v4 }
 0x1ae   : > { %v995_v62 = vpop.permute.xlu1 %994  ;;  %v976_v63 = vpop.permute.xlu0 %975  ;;  %2960 = vmatprep.subr.bf16.mxu0 %v3279_v4 }
 0x1af   : > { %v1250_v9 = vsel %vm1015_vm1, %v995_v62, 0 }
 0x1b2   : > { %v997_v0 = vpop.permute.xlu1 %996  ;;  %v978_v1 = vpop.permute.xlu0 %977 }
 0x1b3   : > { %v1296_v5 = vsel %vm1015_vm1, %v997_v0, 0  ;;  %2939 = vmatmul.mubr.msk.bf16.vlgmr.msra.gmra.mrb[12].mxu1 %vm1015_vm1, %v974_v56  ;;  %2951 = vmatmul.mubr.msk.bf16.vlgmr.msra.gmra.mrb[4].mxu0 %vm1015_vm1, %v978_v1 }
 0x1b4   : > { %2943 = vmatpush3.bf16.xpose.msra.mxu1 %v1158_v2  ;;  %2961 = vmatpush3.bf16.xpose.msra.mxu0 %v1296_v5 }
 0x1b5   : > { %2962 = vmatprep.mubr.msk.bf16.mxu0 %vm3280_vm0, %v3279_v4  ;;  %2944 = vmatprep.mubr.msk.bf16.mxu1 %vm3280_vm0, %v3279_v4 }
 0x1b6   : > { %v980_v6 = vpop.permute.xlu0 %979  ;;  %2954 = vmatprep.subr.bf16.mxu1 %v3279_v4  ;;  %2972 = vmatprep.subr.bf16.mxu0 %v3279_v4  ;;  %v999_v10 = vpop.permute.xlu1 %998 }
 0x1b7   : > { %v1342_v11 = vsel %vm1015_vm1, %v999_v10, 0 }
 0x1ba   : > { %v982_v7 = vpop.permute.xlu0 %981  ;;  %v984_v12 = vpop.permute.xlu1 %983 }
 0x1bb   : > { %2945 = vmatmul.mubr.msk.bf16.vlgmr.msra.gmra.mrb[16].mxu1 %vm1015_vm1, %v976_v63  ;;  %2963 = vmatmul.mubr.msk.bf16.vlgmr.msra.gmra.mrb[8].mxu0 %vm1015_vm1, %v982_v7 }
 0x1bc   : > { %2955 = vmatpush3.bf16.xpose.msra.mxu1 %v1250_v9  ;;  %2956 = vmatprep.mubr.msk.bf16.mxu1 %vm3280_vm0, %v3279_v4 }
 0x1bd   : > { %2966 = vmatprep.subr.bf16.mxu1 %v3279_v4  ;;  %2973 = vmatpush3.bf16.msra.mxu0 %v1470_v8 }
 0x1be   : > { %2974 = vmatprep.mubr.msk.bf16.mxu0 %vm3280_vm0, %v3279_v4  ;;  %2984 = vmatprep.subr.bf16.mxu0 %v3279_v4  ;;  %v1002_v18 = vpop.permute.xlu1 %1001  ;;  %v1004_v47 = vpop.permute.xlu0 %1003 }
 0x1bf   : > { %v1516_v19 = vsel %vm1468_vm2, %v1002_v18, 0  ;;  %v1562_v61 = vsel %vm1468_vm2, %v1004_v47, 0 }
 0x1c2   : > { %v1006_v5 = vpop.permute.xlu1 %1005 }
 0x1c3   : > { %2957 = vmatmul.mubr.msk.bf16.vlgmr.msra.gmra.mrb[20].mxu1 %vm1015_vm1, %v980_v6 }
 0x1c4   : > { %2967 = vmatpush3.bf16.xpose.msra.mxu1 %v1342_v11  ;;  %2968 = vmatprep.mubr.msk.bf16.mxu1 %vm3280_vm0, %v3279_v4 }
 0x1c5   : > { %2978 = vmatprep.subr.bf16.mxu1 %v3279_v4 }
 0x1cb   : > { %2969 = vmatmul.mubr.msk.bf16.vlgmr.msra.gmra.mrb[24].mxu1 %vm1015_vm1, %v984_v12 }
 0x1cc   : > { %2980 = vmatprep.mubr.msk.bf16.mxu1 %vm3280_vm0, %v3279_v4  ;;  %2979 = vmatpush3.bf16.msra.mxu1 %v1516_v19 }
 0x1cd   : > { %2990 = vmatprep.subr.bf16.mxu1 %v3279_v4 }
 0x20c   : > { %v1056_v13 = vpop.f32.mrb[4].mxu1 }
 0x20d   : > { %v2928_v14 = vpop.f32.mrb[5].mxu1  ;;  %v1385_v15 = vsel %vm1384_vm3, %v1056_v13, -inf }
 0x20e   : > { %1386 = vmax.xlane.f32.xlu0 %v1385_v15  ;;  %v1059_v16 = vpop.f32.mrb[6].mxu1 }
 0x20f   : > { %v2929_v17 = vpop.f32.mrb[7].mxu1 }
 0x210   : > { %v1608_v17 = vsel %vm1468_vm2, %v1006_v5, 0 }
 0x27e   : > { %v1102_v20 = vpop.f32.mrb[8].mxu1 }
 0x27f   : > { %v2934_v21 = vpop.f32.mrb[9].mxu1  ;;  %v1388_v22 = vsel %vm1384_vm3, %v1102_v20, -inf }
 0x280   : > { %1389 = vmax.xlane.f32.xlu1 %v1388_v22  ;;  %v1105_v23 = vpop.f32.mrb[10].mxu1 }
 0x281   : > { %v2935_v25 = vpop.f32.mrb[11].mxu1 }
 0x286   : > { %v1148_v26 = vpop.f32.mrb[12].mxu1  ;;  %v3598_v27 = vpop.f32.mrb[4].mxu0 }
 0x287   : > { %v2940_v28 = vpop.f32.mrb[13].mxu1  ;;  %v2952_v29 = vpop.f32.mrb[5].mxu0  ;;  %v1391_v32 = vsel %vm1384_vm3, %v1148_v26, -inf  ;;  %v1397_v63 = vsel %vm1384_vm3, %v3598_v27, -inf }
 0x288   : > { %v1243_v34 = vpop.f32.mrb[6].mxu0  ;;  %1392 = vmax.xlane.f32.xlu0 %v1391_v32  ;;  %v1151_v35 = vpop.f32.mrb[14].mxu1 }
 0x289   : > { %v2941_v36 = vpop.f32.mrb[15].mxu1  ;;  %v2953_v37 = vpop.f32.mrb[7].mxu0 }
 0x28e   : > { %v1194_v38 = vpop.f32.mrb[16].mxu1  ;;  %v3601_v39 = vpop.f32.mrb[8].mxu0 }
 0x28f   : > { %v2946_v40 = vpop.f32.mrb[17].mxu1  ;;  %v2964_v41 = vpop.f32.mrb[9].mxu0  ;;  %v1394_v42 = vsel %vm1384_vm3, %v1194_v38, -inf  ;;  %v1403_v0 = vsel %vm1384_vm3, %v3601_v39, -inf }
 0x290   : > { %v1335_v43 = vpop.f32.mrb[10].mxu0  ;;  %1395 = vmax.xlane.f32.xlu0 %v1394_v42  ;;  %v1197_v44 = vpop.f32.mrb[18].mxu1 }
 0x291   : > { %v2965_v45 = vpop.f32.mrb[11].mxu0  ;;  %1007 = vrot.lane.b32.xlu1 %v3548_v52, %s3283_s9  ;;  %v2947_v46 = vpop.f32.mrb[19].mxu1 }
 0x296   : > { %v3606_v48 = vpop.f32.mrb[20].mxu1 }
 0x297   : > { %v2958_v49 = vpop.f32.mrb[21].mxu1  ;;  %v1400_v1 = vsel %vm1384_vm3, %v3606_v48, -inf }
 0x298   : > { %v1289_v50 = vpop.f32.mrb[22].mxu1 }
 0x299   : > { %v2959_v51 = vpop.f32.mrb[23].mxu1 }
 0x29b   : > { %v1387_v53 = vpop.xlane.xlu0 %1386 }
 0x29c   : > { %v1409_v54 = vsub.f32 %v1056_v13, %v1387_v53 }
 0x29e   : > { %v1417_v55 = vmul.f32 1.442695, %v1409_v54  ;;  %v3608_v56 = vpop.f32.mrb[24].mxu1 }
 0x29f   : > { %v2970_v57 = vpop.f32.mrb[25].mxu1  ;;  %v1406_v2 = vsel %vm1384_vm3, %v3608_v56, -inf }
 0x2a0   : > { %3194 = vpow2.f32 %v1417_v55  ;;  %v1381_v58 = vpop.f32.mrb[26].mxu1 }
 0x2a1   : > { %v2971_v59 = vpop.f32.mrb[27].mxu1 }
 0x2a6   : > { %1009 = vrot.lane.b32.xlu0 %v3548_v52, %s3285_s26 }
 0x2aa   : > { %v3612_v60 = vpop.eup %3194 }
 0x2ab   : > { %v1457_v62 = vpack.c.bf16 %v3612_v60, %v3612_v60  ;;  %v1433_v51 = vsel %vm1384_vm3, %v3612_v60, 0.0 }
 0x2ad   : > { %2975 = vmatmul.mubr.msk.bf16.vlgmr.msra.gmra.mrb[12].mxu0 %vm1384_vm3, %v1457_v62 }
 0x2ae   : > { %2985 = vmatpush3.bf16.msra.mxu0 %v1562_v61  ;;  %2986 = vmatprep.mubr.msk.bf16.mxu0 %vm3280_vm0, %v3279_v4 }
 0x2af   : > { %2996 = vmatprep.subr.bf16.mxu0 %v3279_v4 }
 0x2b5   : > { %1398 = vmax.xlane.f32.xlu1 %v1397_v63 }
 0x2b9   : > { %1404 = vmax.xlane.f32.xlu1 %v1403_v0 }
 0x2c5   : > { %1401 = vmax.xlane.f32.xlu0 %v1400_v1 }
 0x2c9   : > { %1407 = vmax.xlane.f32.xlu0 %v1406_v2 }
 0x2ca   : > { %1011 = vrot.lane.b32.xlu1 %v3548_v52, %s3286_s29 }
 0x2df   : > { %1013 = vrot.lane.b32.xlu0 %v3548_v52, %s3287_s27 }
 0x30d   : > { %v1390_v6 = vpop.xlane.xlu1 %1389 }
 0x30e   : > { %v1410_v7 = vsub.f32 %v1102_v20, %v1390_v6 }
 0x310   : > { %v1419_v8 = vmul.f32 1.442695, %v1410_v7 }
 0x311   : > { %v1008_v19 = vpop.permute.xlu1 %1007 }
 0x312   : > { %3196 = vpow2.f32 %v1419_v8  ;;  %v1654_v22 = vsel %vm1468_vm2, %v1008_v19, 0 }
 0x315   : > { %v1393_v9 = vpop.xlane.xlu0 %1392 }
 0x316   : > { %v1411_v10 = vsub.f32 %v1148_v26, %v1393_v9 }
 0x318   : > { %v1421_v11 = vmul.f32 1.442695, %v1411_v10 }
 0x31a   : > { %3198 = vpow2.f32 %v1421_v11 }
 0x31c   : > { %v3197_v12 = vpop.eup %3196 }
 0x31d   : > { %v1396_v13 = vpop.xlane.xlu0 %1395  ;;  %v1436_v14 = vsel %vm1384_vm3, %v3197_v12, 0.0  ;;  %v1458_v15 = vpack.c.bf16 %v3197_v12, %v3197_v12 }
 0x31e   : > { %v1412_v16 = vsub.f32 %v1194_v38, %v1396_v13  ;;  %1437 = vadd.xlane.f32.xlu1 %v1436_v14 }
 0x31f   : > { %2981 = vmatmul.mubr.msk.bf16.vlgmr.msra.gmra.mrb[28].mxu1 %vm1384_vm3, %v1458_v15  ;;  %v3146_v15 = vld [vmem:[%s3420_s2] sm:$0xff]  }
 0x320   : > { %v1423_v52 = vmul.f32 1.442695, %v1412_v16  ;;  %2991 = vmatpush3.bf16.msra.mxu1 %v1608_v17  ;;  %2992 = vmatprep.mubr.msk.bf16.mxu1 %vm3280_vm0, %v3279_v4 }
 0x321   : > { %3002 = vmatprep.subr.bf16.mxu1 %v3279_v4  ;;  %v1010_v25 = vpop.permute.xlu0 %1009 }
 0x322   : > { %3200 = vpow2.f32 %v1423_v52  ;;  %v1700_v29 = vsel %vm1468_vm2, %v1010_v25, 0 }
 0x324   : > { %v3199_v18 = vpop.eup %3198 }
 0x325   : > { %v1439_v20 = vsel %vm1384_vm3, %v3199_v18, 0.0  ;;  %v1459_v21 = vpack.c.bf16 %v3199_v18, %v3199_v18  ;;  %v3147_v18 = vld [vmem:[%s3420_s2 + $0x8] sm:$0xff]  }
 0x326   : > { %1440 = vadd.xlane.f32.xlu0 %v1439_v20 }
 0x327   : > { %2987 = vmatmul.mubr.msk.bf16.vlgmr.msra.gmra.mrb[16].mxu0 %vm1384_vm3, %v1459_v21 }
 0x328   : > { %2997 = vmatpush3.bf16.msra.mxu0 %v1654_v22  ;;  %2998 = vmatprep.mubr.msk.bf16.mxu0 %vm3280_vm0, %v3279_v4 }
 0x329   : > { %3008 = vmatprep.subr.bf16.mxu0 %v3279_v4 }
 0x32c   : > { %v3201_v23 = vpop.eup %3200 }
 0x32d   : > { %v1442_v26 = vsel %vm1384_vm3, %v3201_v23, 0.0  ;;  %v1460_v28 = vpack.c.bf16 %v3201_v23, %v3201_v23 }
 0x32e   : > { %1443 = vadd.xlane.f32.xlu0 %v1442_v26 }
 0x32f   : > { %2993 = vmatmul.mubr.msk.bf16.vlgmr.msra.gmra.mrb[32].mxu1 %vm1384_vm3, %v1460_v28 }
 0x330   : > { %3003 = vmatpush3.bf16.msra.mxu1 %v1700_v29  ;;  %3004 = vmatprep.mubr.msk.bf16.mxu1 %vm3280_vm0, %v3279_v4 }
 0x331   : > { %3014 = vmatprep.subr.bf16.mxu1 %v3279_v4 }
 0x342   : > { %v1399_v32 = vpop.xlane.xlu1 %1398 }
 0x343   : > { %v1413_v34 = vsub.f32 %v3598_v27, %v1399_v32 }
 0x345   : > { %v1425_v35 = vmul.f32 1.442695, %v1413_v34  ;;  %v3148_v34 = vld [vmem:[%s3420_s2 + $0x10] sm:$0xff]  }
 0x346   : > { %v1405_v36 = vpop.xlane.xlu1 %1404 }
 0x347   : > { %3202 = vpow2.f32 %v1425_v35  ;;  %v1415_v37 = vsub.f32 %v3601_v39, %v1405_v36  ;;  %v3149_v35 = vld [vmem:[%s3420_s2 + $0x18] sm:$0xff]  }
 0x349   : > { %v1429_v38 = vmul.f32 1.442695, %v1415_v37  ;;  %v3150_v37 = vld [vmem:[%s3420_s2 + $0x20] sm:$0xff]  }
 0x34a   : > { %v1012_v41 = vpop.permute.xlu1 %1011 }
 0x34b   : > { %3204 = vpow2.f32 %v1429_v38  ;;  %v1746_v46 = vsel %vm1468_vm2, %v1012_v41, 0 }
 0x351   : > { %v3203_v40 = vpop.eup %3202 }
 0x352   : > { %v1402_v42 = vpop.xlane.xlu0 %1401  ;;  %v1445_v43 = vsel %vm1384_vm3, %v3203_v40, 0.0  ;;  %v1461_v44 = vpack.c.bf16 %v3203_v40, %v3203_v40 }
 0x353   : > { %v1414_v45 = vsub.f32 %v3606_v48, %v1402_v42  ;;  %1446 = vadd.xlane.f32.xlu1 %v1445_v43 }
 0x354   : > { %2999 = vmatmul.mubr.msk.bf16.vlgmr.msra.gmra.mrb[20].mxu0 %vm1384_vm3, %v1461_v44  ;;  %v3151_v44 = vld [vmem:[%s3420_s2 + $0x28] sm:$0xff]  }
 0x355   : > { %v3205_v27 = vpop.eup %3204  ;;  %v1427_v47 = vmul.f32 1.442695, %v1414_v45  ;;  %3009 = vmatpush3.bf16.msra.mxu0 %v1746_v46  ;;  %3010 = vmatprep.mubr.msk.bf16.mxu0 %vm3280_vm0, %v3279_v4 }
 0x356   : > { %v1408_v39 = vpop.xlane.xlu0 %1407  ;;  %v1451_v49 = vsel %vm1384_vm3, %v3205_v27, 0.0  ;;  %3020 = vmatprep.subr.bf16.mxu0 %v3279_v4  ;;  %v1463_v53 = vpack.c.bf16 %v3205_v27, %v3205_v27 }
 0x357   : > { %3206 = vpow2.f32 %v1427_v47  ;;  %v1416_v50 = vsub.f32 %v3608_v56, %v1408_v39  ;;  %1452 = vadd.xlane.f32.xlu1 %v1451_v49  ;;  %v3152_v49 = vld [vmem:[%s3420_s2 + $0x30] sm:$0xff]  }
 0x359   : > { %v1431_v48 = vmul.f32 1.442695, %v1416_v50 }
 0x35a   : > { %v1014_v55 = vpop.permute.xlu0 %1013 }
 0x35b   : > { %3208 = vpow2.f32 %v1431_v48  ;;  %1434 = vadd.xlane.f32.xlu1 %v1433_v51  ;;  %v1792_v56 = vsel %vm1468_vm2, %v1014_v55, 0 }
 0x35c   : > { %3011 = vmatmul.mubr.msk.bf16.vlgmr.msra.gmra.mrb[24].mxu0 %vm1384_vm3, %v1463_v53  ;;  %v3153_v53 = vld [vmem:[%s3420_s2 + $0x38] sm:$0xff]  }
 0x35d   : > { %3036 = vmatprep.mubr.msk.bf16.mxu0 %vm3280_vm0, %v3279_v4  ;;  %3021 = vmatpush3.bf16.msra.mxu0 %v3146_v15 }
 0x35e   : > { %3022 = vmatprep.subr.bf16.mxu0 %v3279_v4 }
 0x361   : > { %v3207_v54 = vpop.eup %3206  ;;  %3023 = vmatpush3.bf16.msra.mxu0 %v3147_v18 }
 0x362   : > { %v1448_v57 = vsel %vm1384_vm3, %v3207_v54, 0.0  ;;  %v1462_v58 = vpack.c.bf16 %v3207_v54, %v3207_v54  ;;  %3024 = vmatprep.subr.bf16.mxu0 %v3279_v4 }
 0x363   : > { %1449 = vadd.xlane.f32.xlu0 %v1448_v57 }
 0x364   : > { %3005 = vmatmul.mubr.msk.bf16.vlgmr.msra.gmra.mrb[36].mxu1 %vm1384_vm3, %v1462_v58 }
 0x365   : > { %v3209_v59 = vpop.eup %3208  ;;  %3015 = vmatpush3.bf16.msra.mxu1 %v1792_v56  ;;  %3016 = vmatprep.mubr.msk.bf16.mxu1 %vm3280_vm0, %v3279_v4 }
 0x366   : > { %v1454_v60 = vsel %vm1384_vm3, %v3209_v59, 0.0  ;;  %v1464_v61 = vpack.c.bf16 %v3209_v59, %v3209_v59  ;;  %3025 = vmatpush3.bf16.msra.mxu0 %v3148_v34 }
 0x367   : > { %1455 = vadd.xlane.f32.xlu0 %v1454_v60  ;;  %3026 = vmatprep.subr.bf16.mxu0 %v3279_v4 }
 0x36a   : > { %3027 = vmatpush3.bf16.msra.mxu0 %v3149_v35 }
 0x36b   : > { %3028 = vmatprep.subr.bf16.mxu0 %v3279_v4 }
 0x36c   : > { %3017 = vmatmul.mubr.msk.bf16.vlgmr.msra.gmra.mrb[40].mxu1 %vm1384_vm3, %v1464_v61 }
 0x36d   : > { %2182 = vmatprep.mubr.bf16.mxu1 %v3278_v3 }
 0x36e   : > { %3029 = vmatpush3.bf16.msra.mxu0 %v3150_v37  ;;  %v3156_v37 = vld [vmem:[%s3444_s1 + $0x4] ss:$8 sps:$4 sm:$0xff]  }
 0x36f   : > { %3030 = vmatprep.subr.bf16.mxu0 %v3279_v4  ;;  %2150 = vmatprep.subr.bf16.mxu1 %v3156_v37 }
 0x372   : > { %3031 = vmatpush3.bf16.msra.mxu0 %v3151_v44 }
 0x373   : > { %3032 = vmatprep.subr.bf16.mxu0 %v3279_v4 }
 0x376   : > { %3033 = vmatpush3.bf16.msra.mxu0 %v3152_v49  ;;  %v3171_v49 = vld [vmem:[%s3444_s1 + $0x54] ss:$8 sps:$4 sm:$0xff]  }
 0x377   : > { %3034 = vmatprep.subr.bf16.mxu0 %v3279_v4 }
 0x37a   : > { %3035 = vmatpush3.bf16.msra.mxu0 %v3153_v53  ;;  %v3177_v53 = vld [vmem:[%s3444_s1 + $0x74] ss:$8 sps:$4 sm:$0xff]  }
 0x380   : > { %v3675_v62 = vpop.f32.mrb[12].mxu0 }
 0x381   : > { %v2976_v63 = vpop.f32.mrb[13].mxu0 }
 0x382   : > { %v1509_v0 = vpop.f32.mrb[14].mxu0 }
 0x383   : > { %v2977_v1 = vpop.f32.mrb[15].mxu0 }
 0x3ab   : > { %v1438_v2 = vpop.xlane.xlu1 %1437 }
 0x3ac   : > { %3210 = vrcp.f32 %v1438_v2 }
 0x3b3   : > { %v1441_v5 = vpop.xlane.xlu0 %1440 }
 0x3b4   : > { %3212 = vrcp.f32 %v1441_v5 }
 0x3b6   : > { %v3211_v6 = vpop.eup %3210 }
 0x3bb   : > { %v1444_v11 = vpop.xlane.xlu0 %1443 }
 0x3bc   : > { %3214 = vrcp.f32 %v1444_v11 }
 0x3be   : > { %v3213_v3 = vpop.eup %3212 }
 0x3c6   : > { %v3215_v21 = vpop.eup %3214 }
 0x3e0   : > { %v1447_v32 = vpop.xlane.xlu1 %1446 }
 0x3e1   : > { %3216 = vrcp.f32 %v1447_v32 }
 0x3e4   : > { %v1453_v36 = vpop.xlane.xlu1 %1452 }
 0x3e5   : > { %3218 = vrcp.f32 %v1453_v36  ;;  %v3154_v36 = vld [vmem:[%s3444_s1] ss:$8 sps:$4 sm:$0xff]  }
 0x3e6   : > { %2151 = vmatpush1.bf16.msra.mxu1 %v3154_v36 }
 0x3eb   : > { %v3217_v38 = vpop.eup %3216 }
 0x3ef   : > { %v3219_v47 = vpop.eup %3218 }
 0x3f0   : > { %v1450_v45 = vpop.xlane.xlu0 %1449 }
 0x3f1   : > { %3220 = vrcp.f32 %v1450_v45 }
 0x3f2   : > { %v1552_v7 = vpop.f32.mrb[28].mxu1 }
 0x3f3   : > { %v1843_v8 = vmul.f32 %v3211_v6, %v1552_v7  ;;  %v2982_v9 = vpop.f32.mrb[29].mxu1 }
 0x3f4   : > { %v1555_v10 = vpop.f32.mrb[30].mxu1  ;;  %v1456_v54 = vpop.xlane.xlu0 %1455 }
 0x3f5   : > { %v1851_v12 = vpack.c.bf16 %v1843_v8, %v1843_v8  ;;  %v2983_v13 = vpop.f32.mrb[31].mxu1  ;;  %3222 = vrcp.f32 %v1456_v54  ;;  %v1435_v9 = vpop.xlane.xlu1 %1434  ;;  %v3175_v54 = vld [vmem:[%s3444_s1 + $0x70] ss:$8 sps:$4 sm:$0xff]  }
 0x3f6   : > { %3224 = vrcp.f32 %v1435_v9  ;;  %v2771_v9 = vld [vmem:[%s3862_s15] ss:$0 sm:$0xff] }
 0x3f7   : > { %1859 = vrot.lane.b32.xlu0 %v1851_v12, %s3287_s27 }
 0x3fa   : > { %v1598_v14 = vpop.f32.mrb[16].mxu0 }
 0x3fb   : > { %v1844_v16 = vmul.f32 %v3213_v3, %v1598_v14  ;;  %v2988_v17 = vpop.f32.mrb[17].mxu0  ;;  %v3221_v58 = vpop.eup %3220 }
 0x3fc   : > { %v1601_v52 = vpop.f32.mrb[18].mxu0 }
 0x3fd   : > { %v1852_v19 = vpack.c.bf16 %v1844_v16, %v1844_v16  ;;  %v2989_v20 = vpop.f32.mrb[19].mxu0 }
 0x3ff   : > { %1862 = vrot.lane.b32.xlu1 %v1852_v19, %s3286_s29  ;;  %v3223_v1 = vpop.eup %3222 }
 0x400   : > { %v3225_v10 = vpop.eup %3224 }
 0x401   : > { %v1842_v12 = vmul.f32 %v3225_v10, %v3675_v62 }
 0x402   : > { %v1644_v22 = vpop.f32.mrb[32].mxu1 }
 0x403   : > { %v1845_v23 = vmul.f32 %v3215_v21, %v1644_v22  ;;  %v2994_v25 = vpop.f32.mrb[33].mxu1  ;;  %v1850_v14 = vpack.c.bf16 %v1842_v12, %v1842_v12 }
 0x404   : > { %v1647_v26 = vpop.f32.mrb[34].mxu1  ;;  %v2762_v25 = vld [vmem:[%s3861_s20] ss:$0 sm:$0xff] }
 0x405   : > { %v1853_v28 = vpack.c.bf16 %v1845_v23, %v1845_v23  ;;  %v2995_v29 = vpop.f32.mrb[35].mxu1 }
 0x407   : > { %1865 = vrot.lane.b32.xlu1 %v1853_v28, %s3285_s26 }
 0x427   : > { %v1690_v40 = vpop.f32.mrb[20].mxu0 }
 0x428   : > { %v1846_v41 = vmul.f32 %v3217_v38, %v1690_v40  ;;  %v3000_v42 = vpop.f32.mrb[21].mxu0  ;;  %v3159_v38 = vld [vmem:[%s3444_s1 + $0x14] ss:$8 sps:$4 sm:$0xff]   ;;  %v3157_v40 = vld [vmem:[%s3444_s1 + $0x10] ss:$8 sps:$4 sm:$0xff]  }
 0x429   : > { %v1693_v43 = vpop.f32.mrb[22].mxu0  ;;  %2152 = vmatprep.subr.bf16.mxu1 %v3159_v38  ;;  %v3160_v42 = vld [vmem:[%s3444_s1 + $0x20] ss:$8 sps:$4 sm:$0xff]  }
 0x42a   : > { %v1854_v46 = vpack.c.bf16 %v1846_v41, %v1846_v41  ;;  %v3001_v27 = vpop.f32.mrb[23].mxu0  ;;  %v3162_v41 = vld [vmem:[%s3444_s1 + $0x24] ss:$8 sps:$4 sm:$0xff]   ;;  %2153 = vmatpush1.bf16.msra.mxu1 %v3157_v40 }
 0x42b   : > { %2154 = vmatprep.subr.bf16.mxu1 %v3162_v41  ;;  %v3163_v27 = vld [vmem:[%s3444_s1 + $0x30] ss:$8 sps:$4 sm:$0xff]  }
 0x42c   : > { %1868 = vrot.lane.b32.xlu0 %v1854_v46, %s3283_s9  ;;  %v3165_v46 = vld [vmem:[%s3444_s1 + $0x34] ss:$8 sps:$4 sm:$0xff]   ;;  %s3866_s9 = sld [smem:[#allocation3_spill]] }
 0x42e   : > { %2155 = vmatpush1.bf16.msra.mxu1 %v3160_v42 }
 0x42f   : > { %v1782_v39 = vpop.f32.mrb[24].mxu0  ;;  %2156 = vmatprep.subr.bf16.mxu1 %v3165_v46 }
 0x430   : > { %v1848_v50 = vmul.f32 %v3219_v47, %v1782_v39  ;;  %v3012_v48 = vpop.f32.mrb[25].mxu0  ;;  %v3168_v47 = vld [vmem:[%s3444_s1 + $0x44] ss:$8 sps:$4 sm:$0xff]   ;;  %v3166_v39 = vld [vmem:[%s3444_s1 + $0x40] ss:$8 sps:$4 sm:$0xff]  }
 0x431   : > { %v1785_v51 = vpop.f32.mrb[26].mxu0  ;;  %v3174_v48 = vld [vmem:[%s3444_s1 + $0x64] ss:$8 sps:$4 sm:$0xff]  }
 0x432   : > { %v1856_v55 = vpack.c.bf16 %v1848_v50, %v1848_v50  ;;  %v3013_v57 = vpop.f32.mrb[27].mxu0  ;;  %2157 = vmatpush1.bf16.msra.mxu1 %v3163_v27  ;;  %v3169_v50 = vld [vmem:[%s3444_s1 + $0x50] ss:$8 sps:$4 sm:$0xff]   ;;  %v3172_v51 = vld [vmem:[%s3444_s1 + $0x60] ss:$8 sps:$4 sm:$0xff]   ;;  %p2808_p8 = scmp.ne.s32.totalorder %s3866_s9, 1 }
 0x433   : > { %2158 = vmatprep.subr.bf16.mxu1 %v3168_v47  ;;  %v3179_v57 = vld [vmem:[%s3454_s14] sm:$0xff]   ;;  %s3867_s29 = sld [smem:[#allocation10_spill]] (!%p2808_p8)  ;;  %vm3289_vm10 = vmmov (!%p2808_p8), 0  }
 0x434   : > { %1874 = vrot.lane.b32.xlu0 %v1856_v55, %s3281_s3  ;;  %v3178_v55 = vld [vmem:[%s3454_s14 + $0x40] sm:$0xff]  }
 0x435   : > { %2873 = vmatprep.subr.bf16.mxu0 %v3178_v55  ;;  %v2806_v27 = vld [vmem:[%s692_s5] ss:$0 sm:$0xff] }
 0x436   : > { %2159 = vmatpush1.bf16.msra.mxu1 %v3166_v39  ;;  %v2807_v39 = vld [vmem:[%s695_s8] ss:$0 sm:$0xff] }
 0x437   : > { %v1736_v56 = vpop.f32.mrb[36].mxu1  ;;  %2160 = vmatprep.subr.bf16.mxu1 %v3171_v49 }
 0x438   : > { %v1847_v59 = vmul.f32 %v3221_v58, %v1736_v56  ;;  %v3006_v60 = vpop.f32.mrb[37].mxu1  ;;  %v3180_v58 = vld [vmem:[%s3454_s14 + $0x48] sm:$0xff]  }
 0x439   : > { %v1739_v61 = vpop.f32.mrb[38].mxu1  ;;  %v3181_v56 = vld [vmem:[%s3454_s14 + $0x8] sm:$0xff]   ;;  %v3183_v60 = vld [vmem:[%s3454_s14 + $0x10] sm:$0xff]   ;;  %v3233_v55 = vld [vmem:[%s3867_s29 + $0x18] sm:$0xff] (!%p2808_p8)  }
 0x43a   : > { %v1855_v63 = vpack.c.bf16 %v1847_v59, %v1847_v59  ;;  %v3007_v0 = vpop.f32.mrb[39].mxu1  ;;  %2161 = vmatpush1.bf16.msra.mxu1 %v3169_v50  ;;  %v3182_v59 = vld [vmem:[%s3454_s14 + $0x50] sm:$0xff]   ;;  %v3184_v61 = vld [vmem:[%s3454_s14 + $0x58] sm:$0xff]  }
 0x43b   : > { %2162 = vmatprep.subr.bf16.mxu1 %v3174_v48  ;;  %v3186_v0 = vld [vmem:[%s3454_s14 + $0x60] sm:$0xff]  }
 0x43c   : > { %1871 = vrot.lane.b32.xlu1 %v1855_v63, %s3284_s21  ;;  %v3185_v63 = vld [vmem:[%s3454_s14 + $0x18] sm:$0xff]   ;;  %v3230_v48 = vld [vmem:[%s3867_s29] sm:$0xff] (!%p2808_p8)  }
 0x43e   : > { %2163 = vmatpush1.bf16.msra.mxu1 %v3172_v51  ;;  %v3288_v51 = vmov (!%p2808_p8), 0.0  }
 0x43f   : > { %v1828_v2 = vpop.f32.mrb[40].mxu1  ;;  %2164 = vmatprep.subr.bf16.mxu1 %v3177_v53  ;;  %v3231_v53 = vld [vmem:[%s3867_s29 + $0x8] sm:$0xff] (!%p2808_p8)  }
 0x440   : > { %v1849_v5 = vmul.f32 %v3223_v1, %v1828_v2  ;;  %v3018_v6 = vpop.f32.mrb[41].mxu1  ;;  %v3187_v1 = vld [vmem:[%s3454_s14 + $0x20] sm:$0xff]   ;;  %v3188_v2 = vld [vmem:[%s3454_s14 + $0x68] sm:$0xff]  }
 0x441   : > { %v1831_v7 = vpop.f32.mrb[42].mxu1 }
 0x442   : > { %v1857_v8 = vpack.c.bf16 %v1849_v5, %v1849_v5  ;;  %v3019_v4 = vpop.f32.mrb[43].mxu1  ;;  %2165 = vmatpush1.bf16.msra.mxu1 %v3175_v54  ;;  %v3189_v5 = vld [vmem:[%s3454_s14 + $0x28] sm:$0xff]   ;;  %v3232_v54 = vld [vmem:[%s3867_s29 + $0x10] sm:$0xff] (!%p2808_p8)  }
 0x444   : > { %1877 = vrot.lane.b32.xlu1 %v1857_v8, %s3282_s4 }
 0x469   : > { %v1860_v13 = vpop.permute.xlu0 %1859 }
 0x46a   : > { %v1881_v15 = vsel %vm1015_vm1, %v1850_v14, %v1860_v13  ;;  %v3190_v14 = vld [vmem:[%s3454_s14 + $0x70] sm:$0xff]  }
 0x471   : > { %v1863_v11 = vpop.permute.xlu1 %1862 }
 0x472   : > { %v1884_v17 = vsel %vm1882_vm4, %v1881_v15, %v1863_v11  ;;  %v2772_v11 = vld [vmem:[%s3864_s22] ss:$0 sm:$0xff]  ;;  %v3191_v15 = vld [vmem:[%s3454_s14 + $0x30] sm:$0xff]  }
 0x479   : > { %v1866_v3 = vpop.permute.xlu1 %1865 }
 0x47a   : > { %v1887_v18 = vsel %vm1885_vm5, %v1884_v17, %v1866_v3  ;;  %v3193_v17 = vld [vmem:[%s3454_s14 + $0x38] sm:$0xff]  }
 0x49e   : > { %v1869_v16 = vpop.permute.xlu0 %1868 }
 0x49f   : > { %v1890_v19 = vsel %vm1888_vm6, %v1887_v18, %v1869_v16  ;;  %v3192_v16 = vld [vmem:[%s3454_s14 + $0x78] sm:$0xff]  }
 0x4a6   : > { %v1875_v62 = vpop.permute.xlu0 %1874 }
 0x4ae   : > { %v1872_v52 = vpop.permute.xlu1 %1871 }
 0x4af   : > { %v1893_v20 = vsel %vm1891_vm7, %v1890_v19, %v1872_v52  ;;  %v2058_v52 = vld [vmem:[%s3449_s0] sm:$0x3] }
 0x4b0   : > { %v1896_v21 = vsel %vm1894_vm8, %v1893_v20, %v1875_v62  ;;  %v2063_v18 = vrot.slane %v2058_v52, %v745_v33  ;;  %v2067_v19 = vrot.slane %v2058_v52, %v749_v31  ;;  %v2789_v33 = vld [vmem:[%s689_s30] ss:$0 sm:$0xff]  ;;  %s3868_s30 = sld [smem:[#allocation11_spill]] (!%p2808_p8) }
 0x4b6   : > { %v1878_v22 = vpop.permute.xlu1 %1877 }
 0x4b7   : > { %v1899_v23 = vsel %vm1897_vm9, %v1896_v21, %v1878_v22 }
 0x4b8   : > { %3037 = vmatmul.mubr.bf16.vlgmr.msra.gmra.mrb[28].mxu0 %v1899_v23 }
 0x4b9   : > { %2874 = vmatpush3.bf16.msra.mxu0 %v3179_v57  ;;  %v3234_v57 = vld [vmem:[%s3867_s29 + $0x20] sm:$0xff] (!%p2808_p8)  }
 0x4ba   : > { %2875 = vmatprep.subr.bf16.mxu0 %v3180_v58  ;;  %v3235_v58 = vld [vmem:[%s3867_s29 + $0x28] sm:$0xff] (!%p2808_p8)  }
 0x4bd   : > { %2876 = vmatpush3.bf16.msra.mxu0 %v3181_v56  ;;  %v3236_v56 = vld [vmem:[%s3867_s29 + $0x30] sm:$0xff] (!%p2808_p8)  }
 0x4be   : > { %2877 = vmatprep.subr.bf16.mxu0 %v3182_v59  ;;  %v3237_v59 = vld [vmem:[%s3867_s29 + $0x38] sm:$0xff] (!%p2808_p8)  }
 0x4c1   : > { %2878 = vmatpush3.bf16.msra.mxu0 %v3183_v60 }
 0x4c2   : > { %2879 = vmatprep.subr.bf16.mxu0 %v3184_v61  ;;  %v2809_v61 = vld [vmem:[%s3868_s30] ss:$0 sm:$0xff] (!%p2808_p8) }
 0x4c5   : > { %2880 = vmatpush3.bf16.msra.mxu0 %v3185_v63 }
 0x4c6   : > { %2881 = vmatprep.subr.bf16.mxu0 %v3186_v0 }
 0x4c9   : > { %2882 = vmatpush3.bf16.msra.mxu0 %v3187_v1 }
 0x4ca   : > { %2883 = vmatprep.subr.bf16.mxu0 %v3188_v2 }
 0x4cd   : > { %2884 = vmatpush3.bf16.msra.mxu0 %v3189_v5 }
 0x4ce   : > { %2885 = vmatprep.subr.bf16.mxu0 %v3190_v14 }
 0x4d1   : > { %2886 = vmatpush3.bf16.msra.mxu0 %v3191_v15 }
 0x4d2   : > { %2887 = vmatprep.subr.bf16.mxu0 %v3192_v16 }
 0x4d5   : > { %2888 = vmatpush3.bf16.msra.mxu0 %v3193_v17 }
 0x4d6   : > { %3040 = vmatprep.subr.bf16.mxu0 (!%p2808_p8), %v3288_v51 }
 0x58b   : > { %v2006_v26 = vpop.f32.mrb[28].mxu0 }
 0x58c   : > { %v2007_v28 = vadd.f32 %v2762_v25, %v2006_v26  ;;  %v3038_v29 = vpop.f32.mrb[29].mxu0 }
 0x58d   : > { %v2009_v32 = vpop.f32.mrb[30].mxu0 }
 0x58e   : > { %v3039_v34 = vpop.f32.mrb[31].mxu0  ;;  %v2012_v35 = vadd.f32 %v2007_v28, %v3502_v24 }
 0x590   : > { %2015 = vadd.xlane.f32.xlu0 %v2012_v35 }
 0x61d   : > { %v2016_v24 = vpop.xlane.xlu0 %2015 }
 0x61e   : > { %v2018_v43 = vmul.f32 0.0078125, %v2016_v24 }
 0x620   : > { %v2019_v44 = vsub.f32 %v2012_v35, %v2018_v43 }
 0x622   : > { %v2020_v45 = vmul.f32 %v2019_v44, %v2019_v44 }
 0x624   : > { %2021 = vadd.xlane.f32.xlu1 %v2020_v45 }
 0x6b1   : > { %v2022_v6 = vpop.xlane.xlu1 %2021 }
 0x6b2   : > { %v2023_v7 = vmul.f32 0.0078125, %v2022_v6 }
 0x6b4   : > { %v2024_v8 = vadd.f32 1e-05, %v2023_v7 }
 0x6b6   : > { %3226 = vrsqrt.f32 %v2024_v8 }
 0x6c0   : > { %v3227_v4 = vpop.eup %3226 }
 0x6c1   : > { %v2026_v10 = vmul.f32 %v3227_v4, %v2019_v44 }
 0x6c3   : > { %v2033_v12 = vmul.f32 %v2771_v9, %v2026_v10 }
 0x6c5   : > { %v2040_v13 = vadd.f32 %v2772_v11, %v2033_v12 }
 0x6c7   : > { %v2041_v3 = vpack.c.bf16 %v2040_v13, %v2040_v13 }
 0x6c9   : > { %2183 = vmatmul.mubr.bf16.vlgmr.msra.gmra.mrb[44].mxu1 %v2041_v3 }
 0x79c   : > { %v2184_v20 = vpop.f32.mrb[44].mxu1 }
 0x79d   : > { %v2185_v62 = vadd.f32 %v2184_v20, %v2063_v18  ;;  %v2186_v21 = vpop.f32.mrb[45].mxu1 }
 0x79e   : > { %v2187_v22 = vadd.f32 %v2186_v21, %v2067_v19  ;;  %v2188_v23 = vpop.f32.mrb[46].mxu1 }
 0x79f   : > { %v2191_v25 = vmax.f32 %v2185_v62, 0.0  ;;  %v2189_v26 = vpop.f32.mrb[47].mxu1 }
 0x7a0   : > { %v2192_v28 = vmax.f32 %v2187_v22, 0.0 }
 0x7a1   : > { %v2193_v32 = vpack.c.bf16 %v2191_v25, %v2191_v25 }
 0x7a2   : > { %v2194_v29 = vpack.c.bf16 %v2192_v28, %v2192_v28 }
 0x7a4   : > { %2362 = vmatprep.mubr.bf16.mxu0 %v2194_v29 }
 0x7a5   : > { %2363 = vmatmul.mubr.bf16.vlgmr.msra.gmra.mrb[32].mxu0 %v2193_v32 }
 0x7a6   : > { %3041 = vmatpush3.bf16.msra.mxu0 (!%p2808_p8), %v3230_v48  ;;  %3056 = vmatprep.mubr.msk.bf16.mxu0 (!%p2808_p8), %vm3289_vm10, %v3288_v51 }
 0x7a7   : > { %3042 = vmatprep.subr.bf16.mxu0 (!%p2808_p8), %v3288_v51 }
 0x7aa   : > { %3043 = vmatpush3.bf16.msra.mxu0 (!%p2808_p8), %v3231_v53 }
 0x7ab   : > { %3044 = vmatprep.subr.bf16.mxu0 (!%p2808_p8), %v3288_v51 }
 0x7ae   : > { %3045 = vmatpush3.bf16.msra.mxu0 (!%p2808_p8), %v3232_v54 }
 0x7af   : > { %3046 = vmatprep.subr.bf16.mxu0 (!%p2808_p8), %v3288_v51 }
 0x7b2   : > { %3047 = vmatpush3.bf16.msra.mxu0 (!%p2808_p8), %v3233_v55 }
 0x7b3   : > { %3048 = vmatprep.subr.bf16.mxu0 (!%p2808_p8), %v3288_v51 }
 0x7b6   : > { %3049 = vmatpush3.bf16.msra.mxu0 (!%p2808_p8), %v3234_v57 }
 0x7b7   : > { %3050 = vmatprep.subr.bf16.mxu0 (!%p2808_p8), %v3288_v51 }
 0x7ba   : > { %3051 = vmatpush3.bf16.msra.mxu0 (!%p2808_p8), %v3235_v58 }
 0x7bb   : > { %3052 = vmatprep.subr.bf16.mxu0 (!%p2808_p8), %v3288_v51 }
 0x7be   : > { %3053 = vmatpush3.bf16.msra.mxu0 (!%p2808_p8), %v3236_v56 }
 0x7bf   : > { %3054 = vmatprep.subr.bf16.mxu0 (!%p2808_p8), %v3288_v51 }
 0x7c2   : > { %3055 = vmatpush3.bf16.msra.mxu0 (!%p2808_p8), %v3237_v59 }
 0x878   : > { %v2889_v34 = vpop.f32.mrb[32].mxu0 }
 0x879   : > { %v2890_v30 = vpop.f32.mrb[33].mxu0 }
 0x87a   : > { %v2891_v31 = vadd.f32 %v2890_v30, %v2889_v34  ;;  %v2892_v35 = vpop.f32.mrb[34].mxu0 }
 0x87b   : > { %v2893_v36 = vpop.f32.mrb[35].mxu0 }
 0x87c   : > { %v2365_v37 = vadd.f32 %v2891_v31, %v2789_v33 }
 0x87e   : > { %v2370_v38 = vadd.f32 %v2365_v37, %v2040_v13 }
 0x880   : > { %2373 = vadd.xlane.f32.xlu0 %v2370_v38 }
 0x90d   : > { %v2374_v40 = vpop.xlane.xlu0 %2373 }
 0x90e   : > { %v2375_v41 = vmul.f32 0.0078125, %v2374_v40 }
 0x910   : > { %v2376_v42 = vsub.f32 %v2370_v38, %v2375_v41 }
 0x912   : > { %v2377_v24 = vmul.f32 %v2376_v42, %v2376_v42 }
 0x914   : > { %2378 = vadd.xlane.f32.xlu0 %v2377_v24 }
 0x9a1   : > { %v2379_v43 = vpop.xlane.xlu0 %2378 }
 0x9a2   : > { %v2380_v44 = vmul.f32 0.0078125, %v2379_v43 }
 0x9a4   : > { %v2381_v45 = vadd.f32 1e-05, %v2380_v44 }
 0x9a6   : > { %3228 = vrsqrt.f32 %v2381_v45 }
 0x9b0   : > { %v3229_v46 = vpop.eup %3228 }
 0x9b1   : > { %v2383_v47 = vmul.f32 %v3229_v46, %v2376_v42  ;;  %2402 = sbr.rel (%p2808_p8) target bundleno = 2704 (0xa90), region = 88 }
 0x9b3   : > { %v2390_v49 = vmul.f32 %v2806_v27, %v2383_v47 }
 0x9b5   : > { %v2397_v50 = vadd.f32 %v2807_v39, %v2390_v49 }
 0x9b7   : > { %2398 = vst [vmem:[#allocation2] sm:$0xff] %v2397_v50  ;;  %v2403_v60 = vpack.c.bf16 (!%p2808_p8), %v2397_v50, %v2397_v50 }
 0x9b9   : > { %3057 = vmatmul.mubr.bf16.vlgmr.msra.gmra.mrb[0].mxu0 %v2403_v60 }
 0xa8c   : > { %v2509_v63 = vpop.f32.mrb[0].mxu0 }
 0xa8d   : > { %v2510_v0 = vadd.f32 %v2809_v61, %v2509_v63  ;;  %v3058_v1 = vpop.f32.mrb[1].mxu0 }
 0xa8e   : > { %v2512_v2 = vpop.f32.mrb[2].mxu0 }
 0xa8f   : > { %2515 = vst [vmem:[%s3471_s10] sm:$0xff] %v2510_v0  ;;  %v3059_v5 = vpop.f32.mrb[3].mxu0 }
 0xa90 PF: > { %s3869_s19 = sld [smem:[#allocation6_spill]]  ;;  %s3870_s18 = sld [smem:[#allocation4_spill]] }
 0xa91   : > { %s3872_s20 = sld [smem:[#allocation7_spill]]  ;;  %s3873_s21 = sld [smem:[#allocation8_spill]] }
 0xa96   : > { %s25_s22 = sadd.s32 1, %s3869_s19   ;;  %s3871_s19 = sld [smem:[#allocation5_spill]] }
 0xa97   : > { %p22_p9 = scmp.ge.s32.totalorder %s25_s22, 6  }
 0xa99   :  { %24 = sbr.rel (!%p22_p9) target bundleno = 12 (0xc), region = 154 }

</bundles_post_ra>
